<compile_context>
chip_gen: v5e
topology: v5e:2x2
jax: 0.10.0
libtpu: 0.0.40
codegen_flags: <defaults>
</compile_context>

<pallas_src>
import jax
import jax.numpy as jnp
import numpy as np
from jax import lax
from jax.experimental import pallas as pl
from jax.experimental.pallas import tpu as pltpu

NUM_CLASSES = 6
IGNORE_INDEX = 255
SMOOTH_FACTOR = 0.05   # SoftCrossEntropyLoss smooth_factor
DICE_SMOOTH = 0.05     # DiceLoss smooth
DICE_EPS = 1e-7        # DiceLoss eps
OOD_EPS = 1e-12        # OODConfidenceLoss clamp eps
OOD_LBDA = 0.1         # OODConfidenceLoss lbda

# lane indices inside the packed (1, 128) scalar accumulator
(_NLL0, _SM0, _NLL1, _SM1, _NLLA, _SMA,
 _ONLL0, _OCF0, _ONLL1, _OCF1, _VCNT) = range(11)
_SCAL_LANES = 128


def _loss_kernel(s0_ref, s1_ref, aux_ref, c0_ref, c1_ref, b0_ref, b1_ref, lab_ref,
                 scal_ref, dice0_ref, dice1_ref):
    C = NUM_CLASSES

    @pl.when(pl.program_id(1) == 0)
    def _():
        scal_ref[...] = jnp.zeros_like(scal_ref)
        dice0_ref[...] = jnp.zeros_like(dice0_ref)
        dice1_ref[...] = jnp.zeros_like(dice1_ref)

    lab = lab_ref[...]                                     # (1, TL) int32
    valid = (lab != IGNORE_INDEX).astype(jnp.float32)      # (1, TL)
    TL = lab.shape[1]

    cls = lax.broadcasted_iota(jnp.int32, (C, TL), 0)      # class id on sublanes
    onehot = (cls == lab).astype(jnp.float32)              # zero column for ignored pixels
    lab_r = jnp.where(lab == 6, 5, lab)                    # OOD remaps class 6 -> 5
    onehot_r = (cls == lab_r).astype(jnp.float32)
    oh_r_any = jnp.sum(onehot_r, axis=0, keepdims=True)    # (1, TL): 1 valid / 0 ignore

    def softmax_stats(x, need_probs):
        # Label-smoothed CE pieces expressed through the LSE (log-probs never
        # materialize); probs reuse e = exp(x - m) — no second exp pass.
        m = jnp.max(x, axis=0, keepdims=True)
        e = jnp.exp(x - m)
        s = jnp.sum(e, axis=0, keepdims=True)
        lse = m + jnp.log(s)                               # (1, TL)
        sel_x = jnp.sum(x * onehot, axis=0, keepdims=True)
        sum_x = jnp.sum(x, axis=0, keepdims=True)
        nll = (lse - sel_x) * valid                        # -logp[target], 0 if ignored
        smooth = (C * lse - sum_x) * valid                 # -sum_c logp_c
        probs = e * pl.reciprocal(s, approx=True) if need_probs else None
        return probs, nll, smooth

    def dice_terms(probs):
        pm = probs * valid                                 # mask predicted probs
        inter = jnp.sum(pm * onehot, axis=1, keepdims=True)    # (C, 1)
        card = jnp.sum(pm + onehot, axis=1, keepdims=True)     # onehot==0 for ignored
        cnt = jnp.sum(onehot, axis=1, keepdims=True)
        return inter, card, cnt

    def ood_terms(probs, conf_logit, b):
        pc = jnp.clip(probs, OOD_EPS, 1.0 - OOD_EPS)
        confidence = jnp.clip(jax.nn.sigmoid(conf_logit), OOD_EPS, 1.0 - OOD_EPS)
        conf = confidence * b + (1.0 - b)                  # half-random interpolation
        # only the target-class entry of log(conf*p + (1-conf)*onehot) is used
        sel_p = jnp.sum(pc * onehot_r, axis=0, keepdims=True)
        interp = conf * sel_p + (1.0 - conf) * oh_r_any
        interp = jnp.where(valid > 0.0, interp, 1.0)       # keep log finite on ignore
        nll_sum = jnp.sum(-jnp.log(interp) * valid, axis=(0, 1), keepdims=True)
        conf_sum = jnp.sum(-jnp.log(confidence), axis=(0, 1), keepdims=True)
        return nll_sum, conf_sum

    # inputs may arrive in bf16; all math runs in f32
    s0 = s0_ref[...].astype(jnp.float32)
    s1 = s1_ref[...].astype(jnp.float32)
    aux = aux_ref[...].astype(jnp.float32)
    c0 = c0_ref[...].astype(jnp.float32)
    c1 = c1_ref[...].astype(jnp.float32)
    b0 = b0_ref[...].astype(jnp.float32)
    b1 = b1_ref[...].astype(jnp.float32)

    probs0, nll0, sm0 = softmax_stats(s0, need_probs=True)
    probs1, nll1, sm1 = softmax_stats(s1, need_probs=True)
    _, nlla, sma = softmax_stats(aux, need_probs=False)

    i0, cd0, ct0 = dice_terms(probs0)
    i1, cd1, ct1 = dice_terms(probs1)
    onll0, ocf0 = ood_terms(probs0, c0, b0)
    onll1, ocf1 = ood_terms(probs1, c1, b1)

    def tsum(v):
        return jnp.sum(v, axis=(0, 1), keepdims=True)      # (1, 1)

    scalars = (tsum(nll0), tsum(sm0), tsum(nll1), tsum(sm1), tsum(nlla), tsum(sma),
               onll0, ocf0, onll1, ocf1, tsum(valid))

    # pack the 11 scalar sums into lanes 0..10 of one lane-dense accumulator
    lane = lax.broadcasted_iota(jnp.int32, (1, _SCAL_LANES), 1)
    upd = jnp.zeros((1, _SCAL_LANES), jnp.float32)
    for idx, v in enumerate(scalars):
        upd = upd + jnp.where(lane == idx, v, 0.0)
    scal_ref[...] += upd

    # per-class dice sums: lane 0 = intersection, 1 = cardinality, 2 = count
    lane_c = lax.broadcasted_iota(jnp.int32, (C, _SCAL_LANES), 1)

    def pack_dice(inter, card, cnt):
        return (jnp.where(lane_c == 0, inter, 0.0)
                + jnp.where(lane_c == 1, card, 0.0)
                + jnp.where(lane_c == 2, cnt, 0.0))

    dice0_ref[...] += pack_dice(i0, cd0, ct0)
    dice1_ref[...] += pack_dice(i1, cd1, ct1)


def vote_stage_training_loss_pallas(logits, labels, b0, b1, *, tile_hw=4096):
    """Training branch with len(logits) == 6. All inputs NCHW (labels NHW)."""
    main_logits, score_0, conf_0, score_1, conf_1, logit_aux = logits
    N, C, H, W = score_0.shape
    assert C == NUM_CLASSES
    HW = H * W
    tile_hw = min(tile_hw, HW)
    assert HW % tile_hw == 0 and tile_hw % 128 == 0, \
        "H*W must be a multiple of a 128-aligned pixel tile"
    P = N * HW

    def flat(x):  # (N, ch, H, W) -> (N, ch, HW); contiguous reshape, no transpose
        return x.reshape(x.shape[0], x.shape[1], HW)

    s0, s1, aux = flat(score_0), flat(score_1), flat(logit_aux)
    c0, c1 = flat(conf_0), flat(conf_1)
    b0f, b1f = flat(b0), flat(b1)
    lab = labels.reshape(N, 1, HW).astype(jnp.int32)

    num_t = HW // tile_hw

    score_spec = pl.BlockSpec((None, C, tile_hw), lambda n, t: (n, 0, t))
    chan1_spec = pl.BlockSpec((None, 1, tile_hw), lambda n, t: (n, 0, t))

    def acc_spec(rows):
        return pl.BlockSpec((None, rows, _SCAL_LANES), lambda n, t: (n, 0, 0))

    out_shape = [jax.ShapeDtypeStruct((N, 1, _SCAL_LANES), jnp.float32),
                 jax.ShapeDtypeStruct((N, C, _SCAL_LANES), jnp.float32),
                 jax.ShapeDtypeStruct((N, C, _SCAL_LANES), jnp.float32)]
    out_specs = [acc_spec(1), acc_spec(C), acc_spec(C)]

    scal, d0, d1 = pl.pallas_call(
        _loss_kernel,
        out_shape=out_shape,
        grid_spec=pltpu.PrefetchScalarGridSpec(
            num_scalar_prefetch=0,
            grid=(N, num_t),
            in_specs=[score_spec, score_spec, score_spec,
                      chan1_spec, chan1_spec, chan1_spec, chan1_spec, chan1_spec],
            out_specs=out_specs,
        ),
        compiler_params=pltpu.CompilerParams(
            dimension_semantics=("parallel", "arbitrary"),
            vmem_limit_bytes=32 * 1024 * 1024,
        ),
    )(s0, s1, aux, c0, c1, b0f, b1f, lab)

    # ---- tiny scalar epilogue in plain JAX (sums per-batch partials) ----
    S = jnp.sum(scal, axis=0)[0]           # (128,) global sums
    D0 = jnp.sum(d0, axis=0)               # (C, 128)
    D1 = jnp.sum(d1, axis=0)

    Pf = jnp.float32(P)
    vcnt = S[_VCNT]

    def sce(nll_s, sm_s):
        return (1.0 - SMOOTH_FACTOR) * (nll_s / Pf) + (SMOOTH_FACTOR / C) * (sm_s / Pf)

    def dice(D):
        inter, card, cnt = D[:, 0], D[:, 1], D[:, 2]
        score = (2.0 * inter + DICE_SMOOTH) / jnp.maximum(card + DICE_SMOOTH, DICE_EPS)
        return jnp.mean((1.0 - score) * (cnt > 0).astype(jnp.float32))

    def ood(onll_s, ocf_s):
        return onll_s / vcnt + OOD_LBDA * (ocf_s / Pf)

    main1 = sce(S[_NLL0], S[_SM0]) + dice(D0)
    main2 = sce(S[_NLL1], S[_SM1]) + dice(D1)
    aux_l = sce(S[_NLLA], S[_SMA])
    ood0 = ood(S[_ONLL0], S[_OCF0])
    ood1 = ood(S[_ONLL1], S[_OCF1])
    return 0.5 * main1 + 0.5 * main2 + 0.5 * ood0 + 0.5 * ood1 + 0.4 * aux_l


# ---------------- pure-JAX reference (for verification) ----------------

def _ref_sce(logits, labels):
    C = logits.shape[1]
    logp = jax.nn.log_softmax(logits, axis=1)
    oh = jax.nn.one_hot(labels, C, axis=1, dtype=jnp.float32)
    valid = (labels != IGNORE_INDEX).astype(jnp.float32)
    nll = -jnp.sum(logp * oh, axis=1) * valid
    smooth = -jnp.sum(logp, axis=1) * valid
    return (1.0 - SMOOTH_FACTOR) * nll.mean() + (SMOOTH_FACTOR / C) * smooth.mean()


def _ref_dice(logits, labels):
    N, C, H, W = logits.shape
    probs = jax.nn.softmax(logits, axis=1)
    y = labels.reshape(N, -1)
    p = probs.reshape(N, C, -1)
    mask = (y != IGNORE_INDEX)
    p = p * mask[:, None, :]
    yh = jax.nn.one_hot(jnp.where(mask, y, 0), C, dtype=jnp.float32)  # (N, HW, C)
    yh = jnp.transpose(yh, (0, 2, 1)) * mask[:, None, :]
    inter = jnp.sum(p * yh, axis=(0, 2))
    card = jnp.sum(p + yh, axis=(0, 2))
    score = (2.0 * inter + DICE_SMOOTH) / jnp.maximum(card + DICE_SMOOTH, DICE_EPS)
    loss = (1.0 - score) * (jnp.sum(yh, axis=(0, 2)) > 0).astype(jnp.float32)
    return loss.mean()


def _ref_ood(score, conf_logit, labels, b):
    C = score.shape[1]
    probs = jnp.clip(jax.nn.softmax(score, axis=1), OOD_EPS, 1.0 - OOD_EPS)
    confidence = jnp.clip(jax.nn.sigmoid(conf_logit), OOD_EPS, 1.0 - OOD_EPS)
    conf = confidence * b + (1.0 - b)
    t = jnp.where(labels == 6, 5, labels)
    oh = jax.nn.one_hot(t, C, axis=1, dtype=jnp.float32)
    interp = jnp.log(conf * probs + (1.0 - conf) * oh)
    valid = (labels != IGNORE_INDEX).astype(jnp.float32)
    nll = -jnp.sum(interp * oh, axis=1) * valid
    loss_nll = jnp.sum(nll) / jnp.sum(valid)
    loss_confid = jnp.mean(-jnp.log(confidence))
    return loss_nll + OOD_LBDA * loss_confid


def vote_stage_training_loss_reference(logits, labels, b0, b1):
    _, s0, c0, s1, c1, aux = logits
    main1 = _ref_sce(s0, labels) + _ref_dice(s0, labels)
    main2 = _ref_sce(s1, labels) + _ref_dice(s1, labels)
    aux_l = _ref_sce(aux, labels)
    ood0 = _ref_ood(s0, c0, labels, b0)
    ood1 = _ref_ood(s1, c1, labels, b1)
    return 0.5 * main1 + 0.5 * main2 + 0.5 * ood0 + 0.5 * ood1 + 0.4 * aux_l


if __name__ == "__main__":
    key = jax.random.PRNGKey(0)
    N, C, H, W = 2, NUM_CLASSES, 16, 16
    ks = jax.random.split(key, 10)

    main_logits = jax.random.normal(ks[0], (N, C, H, W), jnp.float32)
    score_0 = jax.random.normal(ks[1], (N, C, H, W), jnp.float32)
    conf_0 = jax.random.normal(ks[2], (N, 1, H, W), jnp.float32)
    score_1 = jax.random.normal(ks[3], (N, C, H, W), jnp.float32)
    conf_1 = jax.random.normal(ks[4], (N, 1, H, W), jnp.float32)
    logit_aux = jax.random.normal(ks[5], (N, C, H, W), jnp.float32)

    labels = jax.random.randint(ks[6], (N, H, W), 0, NUM_CLASSES, dtype=jnp.int32)
    # a few ignore_index pixels to exercise masking
    labels = labels.at[:, 0, :4].set(IGNORE_INDEX)

    # TODO(synk): torch.bernoulli(uniform(0,1)) half-random mask has marginal
    # p=0.5; drawn here host-side with jax.random for determinism and fed to
    # both the kernel and the reference.
    b0 = jax.random.bernoulli(ks[7], 0.5, (N, 1, H, W)).astype(jnp.float32)
    b1 = jax.random.bernoulli(ks[8], 0.5, (N, 1, H, W)).astype(jnp.float32)

    logits = (main_logits, score_0, conf_0, score_1, conf_1, logit_aux)

    loss = vote_stage_training_loss_pallas(logits, labels, b0, b1)
    loss = jax.block_until_ready(loss)

    ref = vote_stage_training_loss_reference(logits, labels, b0, b1)
    ref = jax.block_until_ready(ref)

    assert np.isfinite(float(loss))
    np.testing.assert_allclose(float(loss), float(ref), rtol=2e-3, atol=2e-3)
    print("KERNEL_OK")
</pallas_src>

<mosaic_0001>
module attributes {stable_mosaic.version = 11 : i64} {
  func.func @_loss_kernel(%arg0: i32, %arg1: i32, %arg2: memref<1x6x256xf32, #tpu.memory_space<vmem>>, %arg3: memref<1x6x256xf32, #tpu.memory_space<vmem>>, %arg4: memref<1x6x256xf32, #tpu.memory_space<vmem>>, %arg5: memref<1x1x256xf32, #tpu.memory_space<vmem>>, %arg6: memref<1x1x256xf32, #tpu.memory_space<vmem>>, %arg7: memref<1x1x256xf32, #tpu.memory_space<vmem>>, %arg8: memref<1x1x256xf32, #tpu.memory_space<vmem>>, %arg9: memref<1x1x256xi32, #tpu.memory_space<vmem>>, %arg10: memref<1x1x128xf32, #tpu.memory_space<vmem>>, %arg11: memref<1x6x128xf32, #tpu.memory_space<vmem>>, %arg12: memref<1x6x128xf32, #tpu.memory_space<vmem>>) attributes {dimension_semantics = [#tpu.dimension_semantics<parallel>, #tpu.dimension_semantics<arbitrary>], iteration_bounds = array<i64: 2, 1>, scalar_prefetch = 0 : i64, scratch_operands = 0 : i64, tpu.core_type = #tpu.core_type<tc>, window_params = [{transform_indices = @transform_0, window_bounds = array<i64: 1, 6, 256>}, {transform_indices = @transform_1, window_bounds = array<i64: 1, 6, 256>}, {transform_indices = @transform_2, window_bounds = array<i64: 1, 6, 256>}, {transform_indices = @transform_3, window_bounds = array<i64: 1, 1, 256>}, {transform_indices = @transform_4, window_bounds = array<i64: 1, 1, 256>}, {transform_indices = @transform_5, window_bounds = array<i64: 1, 1, 256>}, {transform_indices = @transform_6, window_bounds = array<i64: 1, 1, 256>}, {transform_indices = @transform_7, window_bounds = array<i64: 1, 1, 256>}, {transform_indices = @transform_8, window_bounds = array<i64: 1, 1, 128>}, {transform_indices = @transform_9, window_bounds = array<i64: 1, 6, 128>}, {transform_indices = @transform_10, window_bounds = array<i64: 1, 6, 128>}]} {
    %c0_i32 = arith.constant 0 : i32
    %0 = arith.cmpi eq, %arg1, %c0_i32 : i32
    %1 = arith.extui %0 : i1 to i32
    %c0_i32_0 = arith.constant 0 : i32
    %2 = arith.cmpi ne, %1, %c0_i32_0 : i32
    scf.if %2 {
      %cst_125 = arith.constant 0.000000e+00 : f32
      %389 = vector.broadcast %cst_125 : f32 to vector<1x128xf32>
      %c0_126 = arith.constant 0 : index
      %c0_127 = arith.constant 0 : index
      %c0_128 = arith.constant 0 : index
      %390 = vector.load %arg10[%c0_126, %c0_127, %c0_128] : memref<1x1x128xf32, #tpu.memory_space<vmem>>, vector<1x1x128xf32>
      %391 = vector.shape_cast %390 : vector<1x1x128xf32> to vector<1x128xf32>
      %392 = vector.shape_cast %389 : vector<1x128xf32> to vector<1x1x128xf32>
      tpu.vector_store %arg10[%c0_126, %c0_127, %c0_128], %392 {strides = array<i32>} : memref<1x1x128xf32, #tpu.memory_space<vmem>>, vector<1x1x128xf32>,
      %cst_129 = arith.constant 0.000000e+00 : f32
      %393 = vector.broadcast %cst_129 : f32 to vector<6x128xf32>
      %c0_130 = arith.constant 0 : index
      %c0_131 = arith.constant 0 : index
      %c0_132 = arith.constant 0 : index
      %394 = vector.load %arg11[%c0_130, %c0_131, %c0_132] : memref<1x6x128xf32, #tpu.memory_space<vmem>>, vector<1x6x128xf32>
      %395 = vector.shape_cast %394 : vector<1x6x128xf32> to vector<6x128xf32>
      %396 = vector.shape_cast %393 : vector<6x128xf32> to vector<1x6x128xf32>
      tpu.vector_store %arg11[%c0_130, %c0_131, %c0_132], %396 {strides = array<i32>} : memref<1x6x128xf32, #tpu.memory_space<vmem>>, vector<1x6x128xf32>,
      %cst_133 = arith.constant 0.000000e+00 : f32
      %397 = vector.broadcast %cst_133 : f32 to vector<6x128xf32>
      %c0_134 = arith.constant 0 : index
      %c0_135 = arith.constant 0 : index
      %c0_136 = arith.constant 0 : index
      %398 = vector.load %arg12[%c0_134, %c0_135, %c0_136] : memref<1x6x128xf32, #tpu.memory_space<vmem>>, vector<1x6x128xf32>
      %399 = vector.shape_cast %398 : vector<1x6x128xf32> to vector<6x128xf32>
      %400 = vector.shape_cast %397 : vector<6x128xf32> to vector<1x6x128xf32>
      tpu.vector_store %arg12[%c0_134, %c0_135, %c0_136], %400 {strides = array<i32>} : memref<1x6x128xf32, #tpu.memory_space<vmem>>, vector<1x6x128xf32>,
    } else {
    }
    %c0 = arith.constant 0 : index
    %c0_1 = arith.constant 0 : index
    %c0_2 = arith.constant 0 : index
    %3 = vector.load %arg9[%c0, %c0_1, %c0_2] : memref<1x1x256xi32, #tpu.memory_space<vmem>>, vector<1x1x256xi32>
    %4 = vector.shape_cast %3 : vector<1x1x256xi32> to vector<1x256xi32>
    %c255_i32 = arith.constant 255 : i32
    %5 = vector.broadcast %c255_i32 : i32 to vector<1x256xi32>
    %6 = arith.cmpi ne, %4, %5 : vector<1x256xi32>
    %7 = arith.extui %6 : vector<1x256xi1> to vector<1x256xi32>
    %8 = arith.sitofp %7 : vector<1x256xi32> to vector<1x256xf32>
    %9 = tpu.iota {dimensions = array<i32: 0>} : vector<6x256xi32>
    %10 = vector.broadcast %4 : vector<1x256xi32> to vector<6x256xi32>
    %11 = arith.cmpi eq, %9, %10 : vector<6x256xi32>
    %12 = arith.extui %11 : vector<6x256xi1> to vector<6x256xi32>
    %13 = arith.sitofp %12 : vector<6x256xi32> to vector<6x256xf32>
    %c6_i32 = arith.constant 6 : i32
    %14 = vector.broadcast %c6_i32 : i32 to vector<1x256xi32>
    %15 = arith.cmpi eq, %4, %14 : vector<1x256xi32>
    %c5_i32 = arith.constant 5 : i32
    %16 = vector.broadcast %c5_i32 : i32 to vector<1x256xi32>
    %17 = arith.select %15, %16, %4 : vector<1x256xi1>, vector<1x256xi32>
    %18 = vector.broadcast %17 : vector<1x256xi32> to vector<6x256xi32>
    %19 = arith.cmpi eq, %9, %18 : vector<6x256xi32>
    %20 = arith.extui %19 : vector<6x256xi1> to vector<6x256xi32>
    %21 = arith.sitofp %20 : vector<6x256xi32> to vector<6x256xf32>
    %cst = arith.constant dense<0.000000e+00> : vector<256xf32>
    %22 = vector.multi_reduction <add>, %21, %cst [0] : vector<6x256xf32> to vector<256xf32>
    %23 = vector.shape_cast %22 : vector<256xf32> to vector<1x256xf32>
    %c0_3 = arith.constant 0 : index
    %c0_4 = arith.constant 0 : index
    %c0_5 = arith.constant 0 : index
    %24 = vector.load %arg2[%c0_3, %c0_4, %c0_5] : memref<1x6x256xf32, #tpu.memory_space<vmem>>, vector<1x6x256xf32>
    %25 = vector.shape_cast %24 : vector<1x6x256xf32> to vector<6x256xf32>
    %c0_6 = arith.constant 0 : index
    %c0_7 = arith.constant 0 : index
    %c0_8 = arith.constant 0 : index
    %26 = vector.load %arg3[%c0_6, %c0_7, %c0_8] : memref<1x6x256xf32, #tpu.memory_space<vmem>>, vector<1x6x256xf32>
    %27 = vector.shape_cast %26 : vector<1x6x256xf32> to vector<6x256xf32>
    %c0_9 = arith.constant 0 : index
    %c0_10 = arith.constant 0 : index
    %c0_11 = arith.constant 0 : index
    %28 = vector.load %arg4[%c0_9, %c0_10, %c0_11] : memref<1x6x256xf32, #tpu.memory_space<vmem>>, vector<1x6x256xf32>
    %29 = vector.shape_cast %28 : vector<1x6x256xf32> to vector<6x256xf32>
    %c0_12 = arith.constant 0 : index
    %c0_13 = arith.constant 0 : index
    %c0_14 = arith.constant 0 : index
    %30 = vector.load %arg5[%c0_12, %c0_13, %c0_14] : memref<1x1x256xf32, #tpu.memory_space<vmem>>, vector<1x1x256xf32>
    %31 = vector.shape_cast %30 : vector<1x1x256xf32> to vector<1x256xf32>
    %c0_15 = arith.constant 0 : index
    %c0_16 = arith.constant 0 : index
    %c0_17 = arith.constant 0 : index
    %32 = vector.load %arg6[%c0_15, %c0_16, %c0_17] : memref<1x1x256xf32, #tpu.memory_space<vmem>>, vector<1x1x256xf32>
    %33 = vector.shape_cast %32 : vector<1x1x256xf32> to vector<1x256xf32>
    %c0_18 = arith.constant 0 : index
    %c0_19 = arith.constant 0 : index
    %c0_20 = arith.constant 0 : index
    %34 = vector.load %arg7[%c0_18, %c0_19, %c0_20] : memref<1x1x256xf32, #tpu.memory_space<vmem>>, vector<1x1x256xf32>
    %35 = vector.shape_cast %34 : vector<1x1x256xf32> to vector<1x256xf32>
    %c0_21 = arith.constant 0 : index
    %c0_22 = arith.constant 0 : index
    %c0_23 = arith.constant 0 : index
    %36 = vector.load %arg8[%c0_21, %c0_22, %c0_23] : memref<1x1x256xf32, #tpu.memory_space<vmem>>, vector<1x1x256xf32>
    %37 = vector.shape_cast %36 : vector<1x1x256xf32> to vector<1x256xf32>
    %cst_24 = arith.constant dense<0xFF800000> : vector<256xf32>
    %38 = vector.multi_reduction <maximumf>, %25, %cst_24 [0] : vector<6x256xf32> to vector<256xf32>
    %39 = vector.shape_cast %38 : vector<256xf32> to vector<1x256xf32>
    %40 = vector.broadcast %39 : vector<1x256xf32> to vector<6x256xf32>
    %41 = arith.subf %25, %40 : vector<6x256xf32>
    %42 = math.exp %41 : vector<6x256xf32>
    %cst_25 = arith.constant dense<0.000000e+00> : vector<256xf32>
    %43 = vector.multi_reduction <add>, %42, %cst_25 [0] : vector<6x256xf32> to vector<256xf32>
    %44 = vector.shape_cast %43 : vector<256xf32> to vector<1x256xf32>
    %45 = math.log %44 : vector<1x256xf32>
    %46 = arith.addf %39, %45 : vector<1x256xf32>
    %47 = arith.mulf %25, %13 : vector<6x256xf32>
    %cst_26 = arith.constant dense<0.000000e+00> : vector<256xf32>
    %48 = vector.multi_reduction <add>, %47, %cst_26 [0] : vector<6x256xf32> to vector<256xf32>
    %49 = vector.shape_cast %48 : vector<256xf32> to vector<1x256xf32>
    %cst_27 = arith.constant dense<0.000000e+00> : vector<256xf32>
    %50 = vector.multi_reduction <add>, %25, %cst_27 [0] : vector<6x256xf32> to vector<256xf32>
    %51 = vector.shape_cast %50 : vector<256xf32> to vector<1x256xf32>
    %52 = arith.subf %46, %49 : vector<1x256xf32>
    %53 = arith.mulf %52, %8 : vector<1x256xf32>
    %cst_28 = arith.constant 6.000000e+00 : f32
    %54 = vector.broadcast %cst_28 : f32 to vector<1x256xf32>
    %55 = arith.mulf %54, %46 : vector<1x256xf32>
    %56 = arith.subf %55, %51 : vector<1x256xf32>
    %57 = arith.mulf %56, %8 : vector<1x256xf32>
    %58 = tpu.reciprocal %44 {approx = true} : vector<1x256xf32> -> vector<1x256xf32>
    %59 = vector.broadcast %58 : vector<1x256xf32> to vector<6x256xf32>
    %60 = arith.mulf %42, %59 : vector<6x256xf32>
    %cst_29 = arith.constant dense<0xFF800000> : vector<256xf32>
    %61 = vector.multi_reduction <maximumf>, %27, %cst_29 [0] : vector<6x256xf32> to vector<256xf32>
    %62 = vector.shape_cast %61 : vector<256xf32> to vector<1x256xf32>
    %63 = vector.broadcast %62 : vector<1x256xf32> to vector<6x256xf32>
    %64 = arith.subf %27, %63 : vector<6x256xf32>
    %65 = math.exp %64 : vector<6x256xf32>
    %cst_30 = arith.constant dense<0.000000e+00> : vector<256xf32>
    %66 = vector.multi_reduction <add>, %65, %cst_30 [0] : vector<6x256xf32> to vector<256xf32>
    %67 = vector.shape_cast %66 : vector<256xf32> to vector<1x256xf32>
    %68 = math.log %67 : vector<1x256xf32>
    %69 = arith.addf %62, %68 : vector<1x256xf32>
    %70 = arith.mulf %27, %13 : vector<6x256xf32>
    %cst_31 = arith.constant dense<0.000000e+00> : vector<256xf32>
    %71 = vector.multi_reduction <add>, %70, %cst_31 [0] : vector<6x256xf32> to vector<256xf32>
    %72 = vector.shape_cast %71 : vector<256xf32> to vector<1x256xf32>
    %cst_32 = arith.constant dense<0.000000e+00> : vector<256xf32>
    %73 = vector.multi_reduction <add>, %27, %cst_32 [0] : vector<6x256xf32> to vector<256xf32>
    %74 = vector.shape_cast %73 : vector<256xf32> to vector<1x256xf32>
    %75 = arith.subf %69, %72 : vector<1x256xf32>
    %76 = arith.mulf %75, %8 : vector<1x256xf32>
    %cst_33 = arith.constant 6.000000e+00 : f32
    %77 = vector.broadcast %cst_33 : f32 to vector<1x256xf32>
    %78 = arith.mulf %77, %69 : vector<1x256xf32>
    %79 = arith.subf %78, %74 : vector<1x256xf32>
    %80 = arith.mulf %79, %8 : vector<1x256xf32>
    %81 = tpu.reciprocal %67 {approx = true} : vector<1x256xf32> -> vector<1x256xf32>
    %82 = vector.broadcast %81 : vector<1x256xf32> to vector<6x256xf32>
    %83 = arith.mulf %65, %82 : vector<6x256xf32>
    %cst_34 = arith.constant dense<0xFF800000> : vector<256xf32>
    %84 = vector.multi_reduction <maximumf>, %29, %cst_34 [0] : vector<6x256xf32> to vector<256xf32>
    %85 = vector.shape_cast %84 : vector<256xf32> to vector<1x256xf32>
    %86 = vector.broadcast %85 : vector<1x256xf32> to vector<6x256xf32>
    %87 = arith.subf %29, %86 : vector<6x256xf32>
    %88 = math.exp %87 : vector<6x256xf32>
    %cst_35 = arith.constant dense<0.000000e+00> : vector<256xf32>
    %89 = vector.multi_reduction <add>, %88, %cst_35 [0] : vector<6x256xf32> to vector<256xf32>
    %90 = vector.shape_cast %89 : vector<256xf32> to vector<1x256xf32>
    %91 = math.log %90 : vector<1x256xf32>
    %92 = arith.addf %85, %91 : vector<1x256xf32>
    %93 = arith.mulf %29, %13 : vector<6x256xf32>
    %cst_36 = arith.constant dense<0.000000e+00> : vector<256xf32>
    %94 = vector.multi_reduction <add>, %93, %cst_36 [0] : vector<6x256xf32> to vector<256xf32>
    %95 = vector.shape_cast %94 : vector<256xf32> to vector<1x256xf32>
    %cst_37 = arith.constant dense<0.000000e+00> : vector<256xf32>
    %96 = vector.multi_reduction <add>, %29, %cst_37 [0] : vector<6x256xf32> to vector<256xf32>
    %97 = vector.shape_cast %96 : vector<256xf32> to vector<1x256xf32>
    %98 = arith.subf %92, %95 : vector<1x256xf32>
    %99 = arith.mulf %98, %8 : vector<1x256xf32>
    %cst_38 = arith.constant 6.000000e+00 : f32
    %100 = vector.broadcast %cst_38 : f32 to vector<1x256xf32>
    %101 = arith.mulf %100, %92 : vector<1x256xf32>
    %102 = arith.subf %101, %97 : vector<1x256xf32>
    %103 = arith.mulf %102, %8 : vector<1x256xf32>
    %104 = vector.broadcast %8 : vector<1x256xf32> to vector<6x256xf32>
    %105 = arith.mulf %60, %104 : vector<6x256xf32>
    %106 = arith.mulf %105, %13 : vector<6x256xf32>
    %cst_39 = arith.constant dense<0.000000e+00> : vector<6xf32>
    %107 = vector.multi_reduction <add>, %106, %cst_39 [1] : vector<6x256xf32> to vector<6xf32>
    %108 = vector.shape_cast %107 : vector<6xf32> to vector<6x1xf32>
    %109 = arith.addf %105, %13 : vector<6x256xf32>
    %cst_40 = arith.constant dense<0.000000e+00> : vector<6xf32>
    %110 = vector.multi_reduction <add>, %109, %cst_40 [1] : vector<6x256xf32> to vector<6xf32>
    %111 = vector.shape_cast %110 : vector<6xf32> to vector<6x1xf32>
    %cst_41 = arith.constant dense<0.000000e+00> : vector<6xf32>
    %112 = vector.multi_reduction <add>, %13, %cst_41 [1] : vector<6x256xf32> to vector<6xf32>
    %113 = vector.shape_cast %112 : vector<6xf32> to vector<6x1xf32>
    %114 = vector.broadcast %8 : vector<1x256xf32> to vector<6x256xf32>
    %115 = arith.mulf %83, %114 : vector<6x256xf32>
    %116 = arith.mulf %115, %13 : vector<6x256xf32>
    %cst_42 = arith.constant dense<0.000000e+00> : vector<6xf32>
    %117 = vector.multi_reduction <add>, %116, %cst_42 [1] : vector<6x256xf32> to vector<6xf32>
    %118 = vector.shape_cast %117 : vector<6xf32> to vector<6x1xf32>
    %119 = arith.addf %115, %13 : vector<6x256xf32>
    %cst_43 = arith.constant dense<0.000000e+00> : vector<6xf32>
    %120 = vector.multi_reduction <add>, %119, %cst_43 [1] : vector<6x256xf32> to vector<6xf32>
    %121 = vector.shape_cast %120 : vector<6xf32> to vector<6x1xf32>
    %cst_44 = arith.constant dense<0.000000e+00> : vector<6xf32>
    %122 = vector.multi_reduction <add>, %13, %cst_44 [1] : vector<6x256xf32> to vector<6xf32>
    %123 = vector.shape_cast %122 : vector<6xf32> to vector<6x1xf32>
    %cst_45 = arith.constant 9.99999996E-13 : f32
    %cst_46 = arith.constant 1.000000e+00 : f32
    %124 = vector.broadcast %cst_45 : f32 to vector<6x256xf32>
    %125 = arith.maximumf %124, %60 : vector<6x256xf32>
    %126 = vector.broadcast %cst_46 : f32 to vector<6x256xf32>
    %127 = arith.minimumf %126, %125 : vector<6x256xf32>
    %128 = arith.negf %31 : vector<1x256xf32>
    %129 = math.exp %128 : vector<1x256xf32>
    %cst_47 = arith.constant 1.000000e+00 : f32
    %130 = vector.broadcast %cst_47 : f32 to vector<1x256xf32>
    %131 = arith.addf %130, %129 : vector<1x256xf32>
    %132 = arith.divf %130, %131 : vector<1x256xf32>
    %cst_48 = arith.constant 9.99999996E-13 : f32
    %cst_49 = arith.constant 1.000000e+00 : f32
    %133 = vector.broadcast %cst_48 : f32 to vector<1x256xf32>
    %134 = arith.maximumf %133, %132 : vector<1x256xf32>
    %135 = vector.broadcast %cst_49 : f32 to vector<1x256xf32>
    %136 = arith.minimumf %135, %134 : vector<1x256xf32>
    %137 = arith.mulf %136, %35 : vector<1x256xf32>
    %cst_50 = arith.constant 1.000000e+00 : f32
    %138 = vector.broadcast %cst_50 : f32 to vector<1x256xf32>
    %139 = arith.subf %138, %35 : vector<1x256xf32>
    %140 = arith.addf %137, %139 : vector<1x256xf32>
    %141 = arith.mulf %127, %21 : vector<6x256xf32>
    %cst_51 = arith.constant dense<0.000000e+00> : vector<256xf32>
    %142 = vector.multi_reduction <add>, %141, %cst_51 [0] : vector<6x256xf32> to vector<256xf32>
    %143 = vector.shape_cast %142 : vector<256xf32> to vector<1x256xf32>
    %144 = arith.mulf %140, %143 : vector<1x256xf32>
    %cst_52 = arith.constant 1.000000e+00 : f32
    %145 = vector.broadcast %cst_52 : f32 to vector<1x256xf32>
    %146 = arith.subf %145, %140 : vector<1x256xf32>
    %147 = arith.mulf %146, %23 : vector<1x256xf32>
    %148 = arith.addf %144, %147 : vector<1x256xf32>
    %cst_53 = arith.constant 0.000000e+00 : f32
    %149 = vector.broadcast %cst_53 : f32 to vector<1x256xf32>
    %150 = arith.cmpf ogt, %8, %149 : vector<1x256xf32>
    %cst_54 = arith.constant 1.000000e+00 : f32
    %151 = vector.broadcast %cst_54 : f32 to vector<1x256xf32>
    %152 = arith.select %150, %148, %151 : vector<1x256xi1>, vector<1x256xf32>
    %153 = math.log %152 : vector<1x256xf32>
    %cst_55 = arith.constant 0.000000e+00 : f32
    %154 = vector.broadcast %cst_55 : f32 to vector<1x256xf32>
    %155 = arith.subf %154, %153 : vector<1x256xf32>
    %156 = arith.mulf %155, %8 : vector<1x256xf32>
    %157 = vector.shape_cast %156 : vector<1x256xf32> to vector<1x1x256xf32>
    %cst_56 = arith.constant dense<0.000000e+00> : vector<1xf32>
    %158 = vector.multi_reduction <add>, %157, %cst_56 [1, 2] : vector<1x1x256xf32> to vector<1xf32>
    %159 = vector.shape_cast %158 : vector<1xf32> to vector<1x1x1xf32>
    %160 = vector.extract %159[0, 0, 0] : f32 from vector<1x1x1xf32>
    %161 = vector.broadcast %160 : f32 to vector<1x1xf32>
    %162 = math.log %136 : vector<1x256xf32>
    %cst_57 = arith.constant 0.000000e+00 : f32
    %163 = vector.broadcast %cst_57 : f32 to vector<1x256xf32>
    %164 = arith.subf %163, %162 : vector<1x256xf32>
    %165 = vector.shape_cast %164 : vector<1x256xf32> to vector<1x1x256xf32>
    %cst_58 = arith.constant dense<0.000000e+00> : vector<1xf32>
    %166 = vector.multi_reduction <add>, %165, %cst_58 [1, 2] : vector<1x1x256xf32> to vector<1xf32>
    %167 = vector.shape_cast %166 : vector<1xf32> to vector<1x1x1xf32>
    %168 = vector.extract %167[0, 0, 0] : f32 from vector<1x1x1xf32>
    %169 = vector.broadcast %168 : f32 to vector<1x1xf32>
    %cst_59 = arith.constant 9.99999996E-13 : f32
    %cst_60 = arith.constant 1.000000e+00 : f32
    %170 = vector.broadcast %cst_59 : f32 to vector<6x256xf32>
    %171 = arith.maximumf %170, %83 : vector<6x256xf32>
    %172 = vector.broadcast %cst_60 : f32 to vector<6x256xf32>
    %173 = arith.minimumf %172, %171 : vector<6x256xf32>
    %174 = arith.negf %33 : vector<1x256xf32>
    %175 = math.exp %174 : vector<1x256xf32>
    %cst_61 = arith.constant 1.000000e+00 : f32
    %176 = vector.broadcast %cst_61 : f32 to vector<1x256xf32>
    %177 = arith.addf %176, %175 : vector<1x256xf32>
    %178 = arith.divf %176, %177 : vector<1x256xf32>
    %cst_62 = arith.constant 9.99999996E-13 : f32
    %cst_63 = arith.constant 1.000000e+00 : f32
    %179 = vector.broadcast %cst_62 : f32 to vector<1x256xf32>
    %180 = arith.maximumf %179, %178 : vector<1x256xf32>
    %181 = vector.broadcast %cst_63 : f32 to vector<1x256xf32>
    %182 = arith.minimumf %181, %180 : vector<1x256xf32>
    %183 = arith.mulf %182, %37 : vector<1x256xf32>
    %cst_64 = arith.constant 1.000000e+00 : f32
    %184 = vector.broadcast %cst_64 : f32 to vector<1x256xf32>
    %185 = arith.subf %184, %37 : vector<1x256xf32>
    %186 = arith.addf %183, %185 : vector<1x256xf32>
    %187 = arith.mulf %173, %21 : vector<6x256xf32>
    %cst_65 = arith.constant dense<0.000000e+00> : vector<256xf32>
    %188 = vector.multi_reduction <add>, %187, %cst_65 [0] : vector<6x256xf32> to vector<256xf32>
    %189 = vector.shape_cast %188 : vector<256xf32> to vector<1x256xf32>
    %190 = arith.mulf %186, %189 : vector<1x256xf32>
    %cst_66 = arith.constant 1.000000e+00 : f32
    %191 = vector.broadcast %cst_66 : f32 to vector<1x256xf32>
    %192 = arith.subf %191, %186 : vector<1x256xf32>
    %193 = arith.mulf %192, %23 : vector<1x256xf32>
    %194 = arith.addf %190, %193 : vector<1x256xf32>
    %cst_67 = arith.constant 0.000000e+00 : f32
    %195 = vector.broadcast %cst_67 : f32 to vector<1x256xf32>
    %196 = arith.cmpf ogt, %8, %195 : vector<1x256xf32>
    %cst_68 = arith.constant 1.000000e+00 : f32
    %197 = vector.broadcast %cst_68 : f32 to vector<1x256xf32>
    %198 = arith.select %196, %194, %197 : vector<1x256xi1>, vector<1x256xf32>
    %199 = math.log %198 : vector<1x256xf32>
    %cst_69 = arith.constant 0.000000e+00 : f32
    %200 = vector.broadcast %cst_69 : f32 to vector<1x256xf32>
    %201 = arith.subf %200, %199 : vector<1x256xf32>
    %202 = arith.mulf %201, %8 : vector<1x256xf32>
    %203 = vector.shape_cast %202 : vector<1x256xf32> to vector<1x1x256xf32>
    %cst_70 = arith.constant dense<0.000000e+00> : vector<1xf32>
    %204 = vector.multi_reduction <add>, %203, %cst_70 [1, 2] : vector<1x1x256xf32> to vector<1xf32>
    %205 = vector.shape_cast %204 : vector<1xf32> to vector<1x1x1xf32>
    %206 = vector.extract %205[0, 0, 0] : f32 from vector<1x1x1xf32>
    %207 = vector.broadcast %206 : f32 to vector<1x1xf32>
    %208 = math.log %182 : vector<1x256xf32>
    %cst_71 = arith.constant 0.000000e+00 : f32
    %209 = vector.broadcast %cst_71 : f32 to vector<1x256xf32>
    %210 = arith.subf %209, %208 : vector<1x256xf32>
    %211 = vector.shape_cast %210 : vector<1x256xf32> to vector<1x1x256xf32>
    %cst_72 = arith.constant dense<0.000000e+00> : vector<1xf32>
    %212 = vector.multi_reduction <add>, %211, %cst_72 [1, 2] : vector<1x1x256xf32> to vector<1xf32>
    %213 = vector.shape_cast %212 : vector<1xf32> to vector<1x1x1xf32>
    %214 = vector.extract %213[0, 0, 0] : f32 from vector<1x1x1xf32>
    %215 = vector.broadcast %214 : f32 to vector<1x1xf32>
    %216 = vector.shape_cast %53 : vector<1x256xf32> to vector<1x1x256xf32>
    %cst_73 = arith.constant dense<0.000000e+00> : vector<1xf32>
    %217 = vector.multi_reduction <add>, %216, %cst_73 [1, 2] : vector<1x1x256xf32> to vector<1xf32>
    %218 = vector.shape_cast %217 : vector<1xf32> to vector<1x1x1xf32>
    %219 = vector.extract %218[0, 0, 0] : f32 from vector<1x1x1xf32>
    %220 = vector.broadcast %219 : f32 to vector<1x1xf32>
    %221 = vector.shape_cast %57 : vector<1x256xf32> to vector<1x1x256xf32>
    %cst_74 = arith.constant dense<0.000000e+00> : vector<1xf32>
    %222 = vector.multi_reduction <add>, %221, %cst_74 [1, 2] : vector<1x1x256xf32> to vector<1xf32>
    %223 = vector.shape_cast %222 : vector<1xf32> to vector<1x1x1xf32>
    %224 = vector.extract %223[0, 0, 0] : f32 from vector<1x1x1xf32>
    %225 = vector.broadcast %224 : f32 to vector<1x1xf32>
    %226 = vector.shape_cast %76 : vector<1x256xf32> to vector<1x1x256xf32>
    %cst_75 = arith.constant dense<0.000000e+00> : vector<1xf32>
    %227 = vector.multi_reduction <add>, %226, %cst_75 [1, 2] : vector<1x1x256xf32> to vector<1xf32>
    %228 = vector.shape_cast %227 : vector<1xf32> to vector<1x1x1xf32>
    %229 = vector.extract %228[0, 0, 0] : f32 from vector<1x1x1xf32>
    %230 = vector.broadcast %229 : f32 to vector<1x1xf32>
    %231 = vector.shape_cast %80 : vector<1x256xf32> to vector<1x1x256xf32>
    %cst_76 = arith.constant dense<0.000000e+00> : vector<1xf32>
    %232 = vector.multi_reduction <add>, %231, %cst_76 [1, 2] : vector<1x1x256xf32> to vector<1xf32>
    %233 = vector.shape_cast %232 : vector<1xf32> to vector<1x1x1xf32>
    %234 = vector.extract %233[0, 0, 0] : f32 from vector<1x1x1xf32>
    %235 = vector.broadcast %234 : f32 to vector<1x1xf32>
    %236 = vector.shape_cast %99 : vector<1x256xf32> to vector<1x1x256xf32>
    %cst_77 = arith.constant dense<0.000000e+00> : vector<1xf32>
    %237 = vector.multi_reduction <add>, %236, %cst_77 [1, 2] : vector<1x1x256xf32> to vector<1xf32>
    %238 = vector.shape_cast %237 : vector<1xf32> to vector<1x1x1xf32>
    %239 = vector.extract %238[0, 0, 0] : f32 from vector<1x1x1xf32>
    %240 = vector.broadcast %239 : f32 to vector<1x1xf32>
    %241 = vector.shape_cast %103 : vector<1x256xf32> to vector<1x1x256xf32>
    %cst_78 = arith.constant dense<0.000000e+00> : vector<1xf32>
    %242 = vector.multi_reduction <add>, %241, %cst_78 [1, 2] : vector<1x1x256xf32> to vector<1xf32>
    %243 = vector.shape_cast %242 : vector<1xf32> to vector<1x1x1xf32>
    %244 = vector.extract %243[0, 0, 0] : f32 from vector<1x1x1xf32>
    %245 = vector.broadcast %244 : f32 to vector<1x1xf32>
    %246 = vector.shape_cast %8 : vector<1x256xf32> to vector<1x1x256xf32>
    %cst_79 = arith.constant dense<0.000000e+00> : vector<1xf32>
    %247 = vector.multi_reduction <add>, %246, %cst_79 [1, 2] : vector<1x1x256xf32> to vector<1xf32>
    %248 = vector.shape_cast %247 : vector<1xf32> to vector<1x1x1xf32>
    %249 = vector.extract %248[0, 0, 0] : f32 from vector<1x1x1xf32>
    %250 = vector.broadcast %249 : f32 to vector<1x1xf32>
    %251 = tpu.iota {dimensions = array<i32: 1>} : vector<1x128xi32>
    %cst_80 = arith.constant 0.000000e+00 : f32
    %252 = vector.broadcast %cst_80 : f32 to vector<1x128xf32>
    %c0_i32_81 = arith.constant 0 : i32
    %253 = vector.broadcast %c0_i32_81 : i32 to vector<1x128xi32>
    %254 = arith.cmpi eq, %251, %253 : vector<1x128xi32>
    %cst_82 = arith.constant 0.000000e+00 : f32
    %255 = vector.shape_cast %220 : vector<1x1xf32> to vector<1x1xf32>
    %256 = vector.broadcast %255 : vector<1x1xf32> to vector<1x128xf32>
    %257 = vector.broadcast %cst_82 : f32 to vector<1x128xf32>
    %258 = arith.select %254, %256, %257 : vector<1x128xi1>, vector<1x128xf32>
    %259 = arith.addf %252, %258 : vector<1x128xf32>
    %c1_i32 = arith.constant 1 : i32
    %260 = vector.broadcast %c1_i32 : i32 to vector<1x128xi32>
    %261 = arith.cmpi eq, %251, %260 : vector<1x128xi32>
    %cst_83 = arith.constant 0.000000e+00 : f32
    %262 = vector.shape_cast %225 : vector<1x1xf32> to vector<1x1xf32>
    %263 = vector.broadcast %262 : vector<1x1xf32> to vector<1x128xf32>
    %264 = vector.broadcast %cst_83 : f32 to vector<1x128xf32>
    %265 = arith.select %261, %263, %264 : vector<1x128xi1>, vector<1x128xf32>
    %266 = arith.addf %259, %265 : vector<1x128xf32>
    %c2_i32 = arith.constant 2 : i32
    %267 = vector.broadcast %c2_i32 : i32 to vector<1x128xi32>
    %268 = arith.cmpi eq, %251, %267 : vector<1x128xi32>
    %cst_84 = arith.constant 0.000000e+00 : f32
    %269 = vector.shape_cast %230 : vector<1x1xf32> to vector<1x1xf32>
    %270 = vector.broadcast %269 : vector<1x1xf32> to vector<1x128xf32>
    %271 = vector.broadcast %cst_84 : f32 to vector<1x128xf32>
    %272 = arith.select %268, %270, %271 : vector<1x128xi1>, vector<1x128xf32>
    %273 = arith.addf %266, %272 : vector<1x128xf32>
    %c3_i32 = arith.constant 3 : i32
    %274 = vector.broadcast %c3_i32 : i32 to vector<1x128xi32>
    %275 = arith.cmpi eq, %251, %274 : vector<1x128xi32>
    %cst_85 = arith.constant 0.000000e+00 : f32
    %276 = vector.shape_cast %235 : vector<1x1xf32> to vector<1x1xf32>
    %277 = vector.broadcast %276 : vector<1x1xf32> to vector<1x128xf32>
    %278 = vector.broadcast %cst_85 : f32 to vector<1x128xf32>
    %279 = arith.select %275, %277, %278 : vector<1x128xi1>, vector<1x128xf32>
    %280 = arith.addf %273, %279 : vector<1x128xf32>
    %c4_i32 = arith.constant 4 : i32
    %281 = vector.broadcast %c4_i32 : i32 to vector<1x128xi32>
    %282 = arith.cmpi eq, %251, %281 : vector<1x128xi32>
    %cst_86 = arith.constant 0.000000e+00 : f32
    %283 = vector.shape_cast %240 : vector<1x1xf32> to vector<1x1xf32>
    %284 = vector.broadcast %283 : vector<1x1xf32> to vector<1x128xf32>
    %285 = vector.broadcast %cst_86 : f32 to vector<1x128xf32>
    %286 = arith.select %282, %284, %285 : vector<1x128xi1>, vector<1x128xf32>
    %287 = arith.addf %280, %286 : vector<1x128xf32>
    %c5_i32_87 = arith.constant 5 : i32
    %288 = vector.broadcast %c5_i32_87 : i32 to vector<1x128xi32>
    %289 = arith.cmpi eq, %251, %288 : vector<1x128xi32>
    %cst_88 = arith.constant 0.000000e+00 : f32
    %290 = vector.shape_cast %245 : vector<1x1xf32> to vector<1x1xf32>
    %291 = vector.broadcast %290 : vector<1x1xf32> to vector<1x128xf32>
    %292 = vector.broadcast %cst_88 : f32 to vector<1x128xf32>
    %293 = arith.select %289, %291, %292 : vector<1x128xi1>, vector<1x128xf32>
    %294 = arith.addf %287, %293 : vector<1x128xf32>
    %c6_i32_89 = arith.constant 6 : i32
    %295 = vector.broadcast %c6_i32_89 : i32 to vector<1x128xi32>
    %296 = arith.cmpi eq, %251, %295 : vector<1x128xi32>
    %cst_90 = arith.constant 0.000000e+00 : f32
    %297 = vector.shape_cast %161 : vector<1x1xf32> to vector<1x1xf32>
    %298 = vector.broadcast %297 : vector<1x1xf32> to vector<1x128xf32>
    %299 = vector.broadcast %cst_90 : f32 to vector<1x128xf32>
    %300 = arith.select %296, %298, %299 : vector<1x128xi1>, vector<1x128xf32>
    %301 = arith.addf %294, %300 : vector<1x128xf32>
    %c7_i32 = arith.constant 7 : i32
    %302 = vector.broadcast %c7_i32 : i32 to vector<1x128xi32>
    %303 = arith.cmpi eq, %251, %302 : vector<1x128xi32>
    %cst_91 = arith.constant 0.000000e+00 : f32
    %304 = vector.shape_cast %169 : vector<1x1xf32> to vector<1x1xf32>
    %305 = vector.broadcast %304 : vector<1x1xf32> to vector<1x128xf32>
    %306 = vector.broadcast %cst_91 : f32 to vector<1x128xf32>
    %307 = arith.select %303, %305, %306 : vector<1x128xi1>, vector<1x128xf32>
    %308 = arith.addf %301, %307 : vector<1x128xf32>
    %c8_i32 = arith.constant 8 : i32
    %309 = vector.broadcast %c8_i32 : i32 to vector<1x128xi32>
    %310 = arith.cmpi eq, %251, %309 : vector<1x128xi32>
    %cst_92 = arith.constant 0.000000e+00 : f32
    %311 = vector.shape_cast %207 : vector<1x1xf32> to vector<1x1xf32>
    %312 = vector.broadcast %311 : vector<1x1xf32> to vector<1x128xf32>
    %313 = vector.broadcast %cst_92 : f32 to vector<1x128xf32>
    %314 = arith.select %310, %312, %313 : vector<1x128xi1>, vector<1x128xf32>
    %315 = arith.addf %308, %314 : vector<1x128xf32>
    %c9_i32 = arith.constant 9 : i32
    %316 = vector.broadcast %c9_i32 : i32 to vector<1x128xi32>
    %317 = arith.cmpi eq, %251, %316 : vector<1x128xi32>
    %cst_93 = arith.constant 0.000000e+00 : f32
    %318 = vector.shape_cast %215 : vector<1x1xf32> to vector<1x1xf32>
    %319 = vector.broadcast %318 : vector<1x1xf32> to vector<1x128xf32>
    %320 = vector.broadcast %cst_93 : f32 to vector<1x128xf32>
    %321 = arith.select %317, %319, %320 : vector<1x128xi1>, vector<1x128xf32>
    %322 = arith.addf %315, %321 : vector<1x128xf32>
    %c10_i32 = arith.constant 10 : i32
    %323 = vector.broadcast %c10_i32 : i32 to vector<1x128xi32>
    %324 = arith.cmpi eq, %251, %323 : vector<1x128xi32>
    %cst_94 = arith.constant 0.000000e+00 : f32
    %325 = vector.shape_cast %250 : vector<1x1xf32> to vector<1x1xf32>
    %326 = vector.broadcast %325 : vector<1x1xf32> to vector<1x128xf32>
    %327 = vector.broadcast %cst_94 : f32 to vector<1x128xf32>
    %328 = arith.select %324, %326, %327 : vector<1x128xi1>, vector<1x128xf32>
    %329 = arith.addf %322, %328 : vector<1x128xf32>
    %c0_95 = arith.constant 0 : index
    %c0_96 = arith.constant 0 : index
    %c0_97 = arith.constant 0 : index
    %330 = vector.load %arg10[%c0_95, %c0_96, %c0_97] : memref<1x1x128xf32, #tpu.memory_space<vmem>>, vector<1x1x128xf32>
    %331 = vector.shape_cast %330 : vector<1x1x128xf32> to vector<1x128xf32>
    %332 = arith.addf %331, %329 : vector<1x128xf32>
    %c0_98 = arith.constant 0 : index
    %c0_99 = arith.constant 0 : index
    %c0_100 = arith.constant 0 : index
    %333 = vector.load %arg10[%c0_98, %c0_99, %c0_100] : memref<1x1x128xf32, #tpu.memory_space<vmem>>, vector<1x1x128xf32>
    %334 = vector.shape_cast %333 : vector<1x1x128xf32> to vector<1x128xf32>
    %335 = vector.shape_cast %332 : vector<1x128xf32> to vector<1x1x128xf32>
    tpu.vector_store %arg10[%c0_98, %c0_99, %c0_100], %335 {strides = array<i32>} : memref<1x1x128xf32, #tpu.memory_space<vmem>>, vector<1x1x128xf32>,
    %336 = tpu.iota {dimensions = array<i32: 1>} : vector<6x128xi32>
    %c0_101 = arith.constant 0 : index
    %c0_102 = arith.constant 0 : index
    %c0_103 = arith.constant 0 : index
    %337 = vector.load %arg11[%c0_101, %c0_102, %c0_103] : memref<1x6x128xf32, #tpu.memory_space<vmem>>, vector<1x6x128xf32>
    %338 = vector.shape_cast %337 : vector<1x6x128xf32> to vector<6x128xf32>
    %c0_i32_104 = arith.constant 0 : i32
    %339 = vector.broadcast %c0_i32_104 : i32 to vector<6x128xi32>
    %340 = arith.cmpi eq, %336, %339 : vector<6x128xi32>
    %cst_105 = arith.constant 0.000000e+00 : f32
    %341 = vector.shape_cast %108 : vector<6x1xf32> to vector<6x1xf32>
    %342 = vector.broadcast %341 : vector<6x1xf32> to vector<6x128xf32>
    %343 = vector.broadcast %cst_105 : f32 to vector<6x128xf32>
    %344 = arith.select %340, %342, %343 : vector<6x128xi1>, vector<6x128xf32>
    %c1_i32_106 = arith.constant 1 : i32
    %345 = vector.broadcast %c1_i32_106 : i32 to vector<6x128xi32>
    %346 = arith.cmpi eq, %336, %345 : vector<6x128xi32>
    %cst_107 = arith.constant 0.000000e+00 : f32
    %347 = vector.shape_cast %111 : vector<6x1xf32> to vector<6x1xf32>
    %348 = vector.broadcast %347 : vector<6x1xf32> to vector<6x128xf32>
    %349 = vector.broadcast %cst_107 : f32 to vector<6x128xf32>
    %350 = arith.select %346, %348, %349 : vector<6x128xi1>, vector<6x128xf32>
    %351 = arith.addf %344, %350 : vector<6x128xf32>
    %c2_i32_108 = arith.constant 2 : i32
    %352 = vector.broadcast %c2_i32_108 : i32 to vector<6x128xi32>
    %353 = arith.cmpi eq, %336, %352 : vector<6x128xi32>
    %cst_109 = arith.constant 0.000000e+00 : f32
    %354 = vector.shape_cast %113 : vector<6x1xf32> to vector<6x1xf32>
    %355 = vector.broadcast %354 : vector<6x1xf32> to vector<6x128xf32>
    %356 = vector.broadcast %cst_109 : f32 to vector<6x128xf32>
    %357 = arith.select %353, %355, %356 : vector<6x128xi1>, vector<6x128xf32>
    %358 = arith.addf %351, %357 : vector<6x128xf32>
    %359 = arith.addf %338, %358 : vector<6x128xf32>
    %c0_110 = arith.constant 0 : index
    %c0_111 = arith.constant 0 : index
    %c0_112 = arith.constant 0 : index
    %360 = vector.load %arg11[%c0_110, %c0_111, %c0_112] : memref<1x6x128xf32, #tpu.memory_space<vmem>>, vector<1x6x128xf32>
    %361 = vector.shape_cast %360 : vector<1x6x128xf32> to vector<6x128xf32>
    %362 = vector.shape_cast %359 : vector<6x128xf32> to vector<1x6x128xf32>
    tpu.vector_store %arg11[%c0_110, %c0_111, %c0_112], %362 {strides = array<i32>} : memref<1x6x128xf32, #tpu.memory_space<vmem>>, vector<1x6x128xf32>,
    %c0_113 = arith.constant 0 : index
    %c0_114 = arith.constant 0 : index
    %c0_115 = arith.constant 0 : index
    %363 = vector.load %arg12[%c0_113, %c0_114, %c0_115] : memref<1x6x128xf32, #tpu.memory_space<vmem>>, vector<1x6x128xf32>
    %364 = vector.shape_cast %363 : vector<1x6x128xf32> to vector<6x128xf32>
    %c0_i32_116 = arith.constant 0 : i32
    %365 = vector.broadcast %c0_i32_116 : i32 to vector<6x128xi32>
    %366 = arith.cmpi eq, %336, %365 : vector<6x128xi32>
    %cst_117 = arith.constant 0.000000e+00 : f32
    %367 = vector.shape_cast %118 : vector<6x1xf32> to vector<6x1xf32>
    %368 = vector.broadcast %367 : vector<6x1xf32> to vector<6x128xf32>
    %369 = vector.broadcast %cst_117 : f32 to vector<6x128xf32>
    %370 = arith.select %366, %368, %369 : vector<6x128xi1>, vector<6x128xf32>
    %c1_i32_118 = arith.constant 1 : i32
    %371 = vector.broadcast %c1_i32_118 : i32 to vector<6x128xi32>
    %372 = arith.cmpi eq, %336, %371 : vector<6x128xi32>
    %cst_119 = arith.constant 0.000000e+00 : f32
    %373 = vector.shape_cast %121 : vector<6x1xf32> to vector<6x1xf32>
    %374 = vector.broadcast %373 : vector<6x1xf32> to vector<6x128xf32>
    %375 = vector.broadcast %cst_119 : f32 to vector<6x128xf32>
    %376 = arith.select %372, %374, %375 : vector<6x128xi1>, vector<6x128xf32>
    %377 = arith.addf %370, %376 : vector<6x128xf32>
    %c2_i32_120 = arith.constant 2 : i32
    %378 = vector.broadcast %c2_i32_120 : i32 to vector<6x128xi32>
    %379 = arith.cmpi eq, %336, %378 : vector<6x128xi32>
    %cst_121 = arith.constant 0.000000e+00 : f32
    %380 = vector.shape_cast %123 : vector<6x1xf32> to vector<6x1xf32>
    %381 = vector.broadcast %380 : vector<6x1xf32> to vector<6x128xf32>
    %382 = vector.broadcast %cst_121 : f32 to vector<6x128xf32>
    %383 = arith.select %379, %381, %382 : vector<6x128xi1>, vector<6x128xf32>
    %384 = arith.addf %377, %383 : vector<6x128xf32>
    %385 = arith.addf %364, %384 : vector<6x128xf32>
    %c0_122 = arith.constant 0 : index
    %c0_123 = arith.constant 0 : index
    %c0_124 = arith.constant 0 : index
    %386 = vector.load %arg12[%c0_122, %c0_123, %c0_124] : memref<1x6x128xf32, #tpu.memory_space<vmem>>, vector<1x6x128xf32>
    %387 = vector.shape_cast %386 : vector<1x6x128xf32> to vector<6x128xf32>
    %388 = vector.shape_cast %385 : vector<6x128xf32> to vector<1x6x128xf32>
    tpu.vector_store %arg12[%c0_122, %c0_123, %c0_124], %388 {strides = array<i32>} : memref<1x6x128xf32, #tpu.memory_space<vmem>>, vector<1x6x128xf32>,
    return
  }
  func.func @transform_0(%arg0: i32, %arg1: i32) -> (i32, i32, i32) {
    %c0_i32 = arith.constant 0 : i32
    %c0_i32_0 = arith.constant 0 : i32
    return %arg0, %c0_i32, %arg1 : i32, i32, i32
  }
  func.func @transform_1(%arg0: i32, %arg1: i32) -> (i32, i32, i32) {
    %c0_i32 = arith.constant 0 : i32
    %c0_i32_0 = arith.constant 0 : i32
    return %arg0, %c0_i32, %arg1 : i32, i32, i32
  }
  func.func @transform_2(%arg0: i32, %arg1: i32) -> (i32, i32, i32) {
    %c0_i32 = arith.constant 0 : i32
    %c0_i32_0 = arith.constant 0 : i32
    return %arg0, %c0_i32, %arg1 : i32, i32, i32
  }
  func.func @transform_3(%arg0: i32, %arg1: i32) -> (i32, i32, i32) {
    %c0_i32 = arith.constant 0 : i32
    %c0_i32_0 = arith.constant 0 : i32
    return %arg0, %c0_i32, %arg1 : i32, i32, i32
  }
  func.func @transform_4(%arg0: i32, %arg1: i32) -> (i32, i32, i32) {
    %c0_i32 = arith.constant 0 : i32
    %c0_i32_0 = arith.constant 0 : i32
    return %arg0, %c0_i32, %arg1 : i32, i32, i32
  }
  func.func @transform_5(%arg0: i32, %arg1: i32) -> (i32, i32, i32) {
    %c0_i32 = arith.constant 0 : i32
    %c0_i32_0 = arith.constant 0 : i32
    return %arg0, %c0_i32, %arg1 : i32, i32, i32
  }
  func.func @transform_6(%arg0: i32, %arg1: i32) -> (i32, i32, i32) {
    %c0_i32 = arith.constant 0 : i32
    %c0_i32_0 = arith.constant 0 : i32
    return %arg0, %c0_i32, %arg1 : i32, i32, i32
  }
  func.func @transform_7(%arg0: i32, %arg1: i32) -> (i32, i32, i32) {
    %c0_i32 = arith.constant 0 : i32
    %c0_i32_0 = arith.constant 0 : i32
    return %arg0, %c0_i32, %arg1 : i32, i32, i32
  }
  func.func @transform_8(%arg0: i32, %arg1: i32) -> (i32, i32, i32) {
    %c0_i32 = arith.constant 0 : i32
    %c0_i32_0 = arith.constant 0 : i32
    %c0_i32_1 = arith.constant 0 : i32
    return %arg0, %c0_i32, %c0_i32_0 : i32, i32, i32
  }
  func.func @transform_9(%arg0: i32, %arg1: i32) -> (i32, i32, i32) {
    %c0_i32 = arith.constant 0 : i32
    %c0_i32_0 = arith.constant 0 : i32
    %c0_i32_1 = arith.constant 0 : i32
    return %arg0, %c0_i32, %c0_i32_0 : i32, i32, i32
  }
  func.func @transform_10(%arg0: i32, %arg1: i32) -> (i32, i32, i32) {
    %c0_i32 = arith.constant 0 : i32
    %c0_i32_0 = arith.constant 0 : i32
    %c0_i32_1 = arith.constant 0 : i32
    return %arg0, %c0_i32, %c0_i32_0 : i32, i32, i32
  }
}

</mosaic_0001>

<bundles_post_ra>
// kernel: tpu_custom_call.1
= control target key start
LH: loop header
LB: loop body
LE: loop exit
PB: predicated region body
PF: predicated region fallthrough
CT: control target
= control target key end

     0   :  { %16 = vsyncpa [#allocation3], 0  ;;  %s2394_s0 = inlined_call_operand.vmem [shape: f32[2,6,256], index: 0, kind: input, shape index: {}]   ;;  %s2395_s1 = inlined_call_operand.vmem [shape: f32[2,6,256], index: 1, kind: input, shape index: {}]   ;;  %s2396_s2 = inlined_call_operand.vmem [shape: f32[2,6,256], index: 2, kind: input, shape index: {}]   ;;  %s2397_s3 = inlined_call_operand.vmem [shape: f32[2,1,256], index: 3, kind: input, shape index: {}]   ;;  %s2398_s4 = inlined_call_operand.vmem [shape: f32[2,1,256], index: 4, kind: input, shape index: {}]   ;;  %s2399_s5 = inlined_call_operand.vmem [shape: f32[2,1,256], index: 5, kind: input, shape index: {}]   ;;  %s2400_s6 = inlined_call_operand.vmem [shape: f32[2,1,256], index: 6, kind: input, shape index: {}]   ;;  %s2401_s7 = inlined_call_operand.vmem [shape: s32[2,1,256], index: 7, kind: input, shape index: {}]   ;;  %s2402_s8 = inlined_call_operand.hbm [shape: f32[2,1,128], index: 8, kind: output, shape index: {0}]   ;;  %s2403_s9 = inlined_call_operand.vmem [shape: f32[2,6,128], index: 9, kind: output, shape index: {1}]   ;;  %s2404_s10 = inlined_call_operand.vmem [shape: f32[2,6,128], index: 10, kind: output, shape index: {2}]  }
   0x1   :  { %18 = vsyncpa [#allocation3 + $0x1], 0  ;;  %s1881_s13 = smov 0   ;;  %s1883_s14 = smov 0  }
   0x2   :  { %s1885_s15 = smov 0   ;;  %s1887_s16 = smov 0  }
   0x3   :  { %s1889_s17 = smov 0   ;;  %s1891_s18 = smov 0  }
   0x4 LB: > { %2408 = sst [smem:[#allocation5_spill]] %s1811_s15  ;;  %s1589_s19 = sadd.s32 4294967295, %s1823_s18   ;;  %s1823_s18 = sphi %s1891_s18, %s24_s18   ;;  %s1819_s17 = sphi %s1889_s17, %s2425_s17   ;;  %s1815_s16 = sphi %s1887_s16, %s2424_s16   ;;  %s1811_s15 = sphi %s1885_s15, %s2423_s15   ;;  %s1807_s14 = sphi %s1883_s14, %s2427_s14   ;;  %s1803_s13 = sphi %s1881_s13, %s2426_s13  }
   0x5   : > { %2409 = sst [smem:[#allocation6_spill]] %s1819_s17  ;;  %s1590_s20 = sadd.s32 4294967294, %s1823_s18  }
   0x6   : > { %s36_s21 = sadd.s32 1, %s1819_s17  ;;  %s267_s22 = sadd.s32 1, %s1811_s15 }
   0x7   : > { %p38_p0 = scmp.ge.s32.totalorder %s36_s21, 2  ;;  %p277_p1 = scmp.ne.s32.totalorder %s1811_s15, %s1807_s14 }
   0x8   : > { %p278_p2 = scmp.eq.s32.totalorder %s1589_s19, 1  ;;  %p283_p3 = scmp.ne.s32.totalorder %s1807_s14, %s1803_s13 }
   0x9   : > { %s2429_s21 = smov (%p38_p0, %s36_s21), 0  ;;  %p284_p5 = scmp.eq.s32.totalorder %s1590_s20, 1 }
   0xa   : > { %2410 = sst [smem:[#allocation7_spill]] %s2429_s21  ;;  %p1921_p4 = por %p278_p2, %p277_p1 }
   0xb   : > { %s264_s24 = ssub.s32 %s1819_s17, %s2429_s21  ;;  %p1593_p6 = scmp.ge.s32.totalorder %s1823_s18, 1 }
   0xc   : > { %p265_p7 = scmp.eq.s32.totalorder %s264_s24, 0  ;;  %p1928_p8 = por %p284_p5, %p283_p3 }
   0xd   : > { %p453_p9 = scmp.lt.s32.totalorder %s1823_s18, 3 }
   0xe   : > { %s1934_s26 = scalar_select %p265_p7, %s1811_s15, %s267_s22  }
   0xf   : > { %p454_p10 = pnand %p1593_p6, %p453_p9 }
  0x10   : > { %2413 = sst [smem:[#allocation8_spill]] %s1934_s26  ;;  %p561_p11 = scmp.lt.s32.totalorder (!%p454_p10), %s1815_s16, 1 }
  0x11   : > { %457 = sbr.rel (%p454_p10) target bundleno = 354 (0x162), region = 52  ;;  %s546_s26 = sand.u32 (!%p454_p10), 1, %s1807_s14  }
  0x12   : > { %s2296_s11 = scalar_lea.vmem (!%p454_p10), [#allocation2], %s546_s26 }
  0x16   : > { %s1938_s27 = scalar_select %p561_p11, %s1815_s16, 1  ;;  %vm674_vm0 = vcmask 1045504   ;;  %v1825_v34 = vmov 0.0   ;;  %v654_v39 = vlaneseq  ;;  %vm1036_vm15 = vcmask 1040384  }
  0x17   : > { %647 = vst [vmem:[%s2296_s11] sm:$0x1] %v1825_v34 }
  0x18   : > { %s1941_s28 = sshll.u32 %s1938_s27, 1  ;;  %s1944_s29 = sshll.u32 %s1938_s27, 4  ;;  %v2004_v51 = vshrl.u32 %v654_v39, 7 }
  0x19   : > { %s597_s12 = scalar_lea.vmem %s2397_s3, %s1941_s28  ;;  %s606_s22 = scalar_lea.vmem %s2398_s4, %s1941_s28 }
  0x1a   : > { %v695_v0 = vld [vmem:[%s597_s12] sm:$0x3]  ;;  %s568_s17 = scalar_lea.vmem %s2394_s0, %s1944_s29  ;;  %s578_s30 = scalar_lea.vmem %s2395_s1, %s1944_s29 }
  0x1b   : > { %v696_v1 = vld [vmem:[%s606_s22] sm:$0x3]  ;;  %v1612_v2 = vmul.f32 -1.442695, %v695_v0  ;;  %v1964_v5 = vld [vmem:[%s568_s17 + $0x8] sm:$0x3f]  ;;  %s633_s21 = scalar_lea.vmem %s2401_s7, %s1941_s28  ;;  %s615_s12 = scalar_lea.vmem %s2399_s5, %s1941_s28 }
  0x1c   : > { %v1958_v3 = vld [vmem:[%s568_s17] sm:$0x3f]  ;;  %v1613_v4 = vmul.f32 -1.442695, %v696_v1  ;;  %v706_v8 = vsel %vm674_vm0, %v1964_v5, -inf  ;;  %s624_s22 = scalar_lea.vmem %s2400_s6, %s1941_s28 }
  0x1d   : > { %1697 = vpow2.f32 %v1612_v2  ;;  %v699_v6 = vsel %vm674_vm0, %v1958_v3, -inf  ;;  %v1970_v9 = vld [vmem:[%s578_s30] sm:$0x3f]  ;;  %v707_v10 = vrot.slane %v706_v8, 4  ;;  %v1972_v11 = vld [vmem:[%s578_s30 + $0x8] sm:$0x3f]  ;;  %s2075_s30 = scalar_lea.vmem %s2396_s2, %s1944_s29 }
  0x1e   : > { %v700_v7 = vrot.slane %v699_v6, 4  ;;  %1699 = vpow2.f32 %v1613_v4  ;;  %v788_v12 = vsel %vm674_vm0, %v1970_v9, -inf  ;;  %v795_v15 = vsel %vm674_vm0, %v1972_v11, -inf  ;;  %v650_v23 = vld [vmem:[%s633_s21] sm:$0x3]  ;;  %s1605_s29 = sshll.u32 %s1938_s27, 3 }
  0x1f   : > { %v789_v14 = vrot.slane %v788_v12, 4  ;;  %v708_v16 = vmax.f32 %v706_v8, %v707_v10  ;;  %v796_v17 = vrot.slane %v795_v15, 4  ;;  %vm651_vm1 = vcmp.ne.s32.totalorder %v650_v23, 255  ;;  %v1989_v37 = vld [vmem:[%s615_s12] sm:$0x3]  ;;  %s2289_s21 = scalar_lea.vmem %s2403_s9, %s1605_s29  ;;  %s2303_s20 = scalar_lea.vmem %s2404_s10, %s1605_s29 }
  0x20   : > { %v701_v13 = vmax.f32 %v699_v6, %v700_v7  ;;  %v1987_v35 = vsel %vm651_vm1, 1.0, %v1825_v34  ;;  %v656_v36 = vperm.slane %v650_v23, 0  ;;  %v657_v42 = vperm.slane %v650_v23, 1  ;;  %648 = vst [vmem:[%s2289_s21] sm:$0x3f] %v1825_v34 }
  0x21   : > { %v790_v19 = vmax.f32 %v788_v12, %v789_v14  ;;  %v709_v21 = vrot.slane %v708_v16, 2  ;;  %v797_v22 = vmax.f32 %v795_v15, %v796_v17  ;;  %vm664_vm2 = vcmp.eq.s32.totalorder %v650_v23, 6  ;;  %649 = vst [vmem:[%s2303_s20] sm:$0x3f] %v1825_v34 }
  0x22   : > { %v702_v18 = vrot.slane %v701_v13, 2  ;;  %v1996_v45 = vperm.slane %v1987_v35, 0  ;;  %v1015_v47 = vsub.f32 1.0, %v1989_v37  ;;  %v2008_v54 = vsel %vm664_vm2, 5, %v650_v23 }
  0x23   : > { %v1698_v20 = vpop.eup %1697  ;;  %v710_v27 = vmax.f32 %v708_v16, %v709_v21  ;;  %v791_v28 = vrot.slane %v790_v19, 2  ;;  %v798_v29 = vrot.slane %v797_v22, 2  ;;  %vm658_vm6 = vcmp.eq.s32.totalorder %v2004_v51, %v656_v36 }
  0x24   : > { %v996_v24 = vadd.f32 1.0, %v1698_v20  ;;  %v703_v25 = vmax.f32 %v701_v13, %v702_v18  ;;  %v1700_v26 = vpop.eup %1699  ;;  %vm659_vm7 = vcmp.eq.s32.totalorder %v2004_v51, %v657_v42  ;;  %v2015_v60 = vsel %vm658_vm6, 1.0, %v1825_v34 }
  0x25   : > { %v1098_v31 = vadd.f32 1.0, %v1700_v26  ;;  %v711_v33 = vrot.slane %v710_v27, 1  ;;  %v792_v41 = vmax.f32 %v790_v19, %v791_v28  ;;  %v799_v44 = vmax.f32 %v797_v22, %v798_v29 }
  0x26   : > { %1701 = vrcp.f32 %v996_v24  ;;  %v1006_v30 = vand.u32 2147483647, %v996_v24  ;;  %v704_v32 = vrot.slane %v703_v25, 1  ;;  %v1008_v38 = vand.u32 2147483648, %v996_v24 }
  0x27   : > { %1703 = vrcp.f32 %v1098_v31  ;;  %v1993_v43 = vmax.f32 %v710_v27, %v711_v33  ;;  %vm1002_vm3 = vweird.f32 %v996_v24  ;;  %v1108_v50 = vand.u32 2147483647, %v1098_v31 }
  0x28   : > { %v1991_v40 = vmax.f32 %v703_v25, %v704_v32  ;;  %vm1998_vm4 = vcmp.eq.f32.partialorder %v1006_v30, 8.507059e+37  ;;  %v1009_v49 = vor.u32 1.1754944e-38, %v1008_v38  ;;  %v793_v56 = vrot.slane %v792_v41, 1 }
  0x29   : > { %v714_v55 = vsub.f32 %v1964_v5, %v1993_v43  ;;  %vm1104_vm5 = vweird.f32 %v1098_v31  ;;  %v800_v57 = vrot.slane %v799_v44, 1  ;;  %v2018_v61 = vsel %vm659_vm7, 1.0, %v1825_v34 }
  0x2a   : > { %v713_v52 = vsub.f32 %v1958_v3, %v1991_v40  ;;  %vm2020_vm9 = vcmp.eq.f32.partialorder %v1108_v50, 8.507059e+37  ;;  %v1110_v0 = vand.u32 2147483648, %v1098_v31  ;;  %v739_v6 = vmul.f32 %v2015_v60, %v1958_v3 }
  0x2b   : > { %v717_v4 = vmul.f32 1.442695, %v714_v55  ;;  %v740_v10 = vmul.f32 %v2018_v61, %v1964_v5  ;;  %v2033_v12 = vmax.f32 %v792_v41, %v793_v56  ;;  %v2036_v15 = vmax.f32 %v799_v44, %v800_v57  ;;  %v2080_v56 = vld [vmem:[%s624_s22] sm:$0x3] }
  0x2c   : > { %v1702_v48 = vpop.eup %1701  ;;  %v715_v1 = vmul.f32 1.442695, %v713_v52  ;;  %v741_v14 = vsel %vm674_vm0, %v739_v6, 0.0  ;;  %v1111_v22 = vor.u32 1.1754944e-38, %v1110_v0  ;;  %v666_v30 = vperm.slane %v2008_v54, 0 }
  0x2d   : > { %v998_v53 = vmul.f32 %v1702_v48, %v996_v24  ;;  %v1704_v58 = vpop.eup %1703  ;;  %vm1003_vm8 = vweird.f32 %v1702_v48  ;;  %v742_v17 = vrot.slane %v741_v14, 4  ;;  %v748_v18 = vsel %vm674_vm0, %v740_v10, 0.0 }
  0x2e   : > { %v1100_v62 = vmul.f32 %v1704_v58, %v1098_v31  ;;  %vm1105_vm10 = vweird.f32 %v1704_v58  ;;  %vm2027_vm11 = vmor %vm1002_vm3, %vm1003_vm8  ;;  %1705 = vpow2.f32 %v715_v1  ;;  %v802_v19 = vsub.f32 %v1970_v9, %v2033_v12 }
  0x2f   : > { %v999_v59 = vsub.f32 1.0, %v998_v53  ;;  %1707 = vpow2.f32 %v717_v4  ;;  %vm2045_vm12 = vmor %vm1104_vm5, %vm1105_vm10  ;;  %v749_v23 = vrot.slane %v748_v18, 4  ;;  %v803_v24 = vsub.f32 %v1972_v11, %v2036_v15 }
  0x30   : > { %v1101_v8 = vsub.f32 1.0, %v1100_v62  ;;  %v743_v27 = vadd.f32 %v742_v17, %v741_v14  ;;  %v804_v28 = vmul.f32 1.442695, %v802_v19  ;;  %v667_v31 = vperm.slane %v2008_v54, 1 }
  0x31   : > { %v1000_v2 = vmul.f32 %v1702_v48, %v999_v59  ;;  %v750_v32 = vadd.f32 %v749_v23, %v748_v18  ;;  %v806_v41 = vmul.f32 1.442695, %v803_v24  ;;  %v2078_v55 = vperm.slane %v1987_v35, 1 }
  0x32   : > { %v1102_v16 = vmul.f32 %v1704_v58, %v1101_v8  ;;  %v744_v38 = vrot.slane %v743_v27, 2  ;;  %1709 = vpow2.f32 %v804_v28  ;;  %vm668_vm13 = vcmp.eq.s32.totalorder %v2004_v51, %v666_v30 }
  0x33   : > { %v1001_v13 = vadd.f32 %v1702_v48, %v1000_v2  ;;  %vm669_vm14 = vcmp.eq.s32.totalorder %v2004_v51, %v667_v31  ;;  %v2088_v2 = vld [vmem:[%s2075_s30] sm:$0x3f]  ;;  %v1117_v6 = vsub.f32 1.0, %v2080_v56  ;;  %v2095_v10 = vsel %vm668_vm13, 1.0, %v1825_v34 }
  0x34   : > { %v1103_v26 = vadd.f32 %v1704_v58, %v1102_v16  ;;  %v2055_v33 = vpop.eup %1705  ;;  %v745_v54 = vadd.f32 %v744_v38, %v743_v27  ;;  %v2098_v51 = vsel %vm669_vm14, 1.0, %v1825_v34  ;;  %v828_v18 = vmul.f32 %v2015_v60, %v1970_v9 }
  0x35   : > { %v1005_v20 = vsel %vm2027_vm11, %v1702_v48, %v1001_v13  ;;  %v2063_v42 = vpop.eup %1707  ;;  %v719_v48 = vsel %vm674_vm0, %v2055_v33, 0.0  ;;  %v2106_v19 = vsel %vm674_vm0, %v2088_v2, -inf  ;;  %v829_v24 = vmul.f32 %v2018_v61, %v1972_v11 }
  0x36   : > { %v1010_v25 = vsel %vm1998_vm4, %v1009_v49, %v1005_v20  ;;  %v1107_v36 = vsel %vm2045_vm12, %v1704_v58, %v1103_v26  ;;  %v751_v49 = vrot.slane %v750_v32, 2  ;;  %v720_v52 = vrot.slane %v719_v48, 4 }
  0x37   : > { %v1012_v29 = vmax.f32 %v1010_v25, 1e-12  ;;  %v1112_v46 = vsel %vm2020_vm9, %v1111_v22, %v1107_v36  ;;  %v726_v53 = vsel %vm674_vm0, %v2063_v42, 0.0  ;;  %v746_v1 = vrot.slane %v745_v54, 1 }
  0x38   : > { %v1114_v50 = vmax.f32 %v1112_v46, 1e-12  ;;  %v727_v57 = vrot.slane %v726_v53, 4  ;;  %v752_v58 = vadd.f32 %v751_v49, %v750_v32  ;;  %v721_v62 = vadd.f32 %v720_v52, %v719_v48  ;;  %v2090_v4 = vpop.eup %1709 }
  0x39   : > { %v1013_v44 = vmin.f32 %v1012_v29, 1.0  ;;  %v808_v14 = vsel %vm674_vm0, %v2090_v4, 0.0  ;;  %v2112_v23 = vadd.f32 %v746_v1, %v745_v54  ;;  %v830_v31 = vsel %vm674_vm0, %v828_v18, 0.0 }
  0x3a   : > { %v2082_v59 = vmin.f32 %v1114_v50, 1.0  ;;  %v728_v0 = vadd.f32 %v727_v57, %v726_v53  ;;  %v722_v7 = vrot.slane %v721_v62, 2  ;;  %v753_v8 = vrot.slane %v752_v58, 1 }
  0x3b   : > { %1711 = vlog2.f32 %v1013_v44  ;;  %v1014_v63 = vmul.f32 %v1013_v44, %v1989_v37  ;;  %v809_v17 = vrot.slane %v808_v14, 4  ;;  %v837_v37 = vsel %vm674_vm0, %v829_v24, 0.0 }
  0x3c   : > { %1713 = vpow2.f32 %v806_v41  ;;  %v729_v13 = vrot.slane %v728_v0, 2  ;;  %v723_v16 = vadd.f32 %v722_v7, %v721_v62  ;;  %v2116_v27 = vadd.f32 %v753_v8, %v752_v58 }
  0x3d   : > { %1715 = vlog2.f32 %v2082_v59  ;;  %v2110_v21 = vadd.f32 %v1015_v47, %v1014_v63  ;;  %v810_v28 = vadd.f32 %v809_v17, %v808_v14  ;;  %v873_v47 = vrot.slane %v2106_v19, 4 }
  0x3e   : > { %v730_v22 = vadd.f32 %v729_v13, %v728_v0  ;;  %v724_v26 = vrot.slane %v723_v16, 1  ;;  %v831_v50 = vrot.slane %v830_v31, 4  ;;  %v838_v18 = vrot.slane %v837_v37, 4 }
  0x3f   : > { %v811_v41 = vrot.slane %v810_v28, 2  ;;  %v755_v24 = vsel %vm674_vm0, %v1958_v3, 0.0  ;;  %vm1048_vm1 = vcmp.gt.f32.partialorder %v1987_v35, 0.0 }
  0x40   : > { %v731_v30 = vrot.slane %v730_v22, 1  ;;  %v725_v38 = vadd.f32 %v724_v26, %v723_v16  ;;  %v832_v62 = vadd.f32 %v831_v50, %v830_v31 }
  0x41   : > { %v1712_v20 = vpop.eup %1711  ;;  %v812_v54 = vadd.f32 %v811_v41, %v810_v28  ;;  %v756_v41 = vrot.slane %v755_v24, 4 }
  0x42   : > { %v1072_v25 = vmul.f32 0.6931472, %v1712_v20  ;;  %v2118_v29 = vpop.eup %1713  ;;  %v732_v48 = vadd.f32 %v731_v30, %v730_v22  ;;  %1717 = vlog2.f32 %v725_v38  ;;  %v833_v17 = vrot.slane %v832_v62, 2 }
  0x43   : > { %v1716_v32 = vpop.eup %1715  ;;  %v815_v44 = vsel %vm674_vm0, %v2118_v29, 0.0  ;;  %v813_v1 = vrot.slane %v812_v54, 1 }
  0x44   : > { %v1073_v36 = vsub.f32 0.0, %v1072_v25  ;;  %v1167_v46 = vmul.f32 0.6931472, %v1716_v32  ;;  %v816_v49 = vrot.slane %v815_v44, 4  ;;  %1719 = vlog2.f32 %v732_v48 }
  0x45   : > { %1721 = vrcp.f32 %v725_v38  ;;  %v814_v14 = vadd.f32 %v813_v1, %v812_v54  ;;  %v762_v25 = vsel %vm674_vm0, %v1964_v5, 0.0  ;;  %v834_v31 = vadd.f32 %v833_v17, %v832_v62 }
  0x46   : > { %v1075_v52 = vperm.slane %v1073_v36, 0  ;;  %v1076_v53 = vperm.slane %v1073_v36, 1  ;;  %v1168_v57 = vsub.f32 0.0, %v1167_v46  ;;  %v817_v58 = vadd.f32 %v816_v49, %v815_v44 }
  0x47   : > { %1723 = vrcp.f32 %v732_v48  ;;  %v839_v38 = vadd.f32 %v838_v18, %v837_v37  ;;  %v835_v49 = vrot.slane %v834_v31, 1  ;;  %v763_v50 = vrot.slane %v762_v25, 4 }
  0x48   : > { %v1079_v63 = vsel %vm1036_vm15, %v1075_v52, 0.0  ;;  %v1080_v0 = vsel %vm1036_vm15, %v1076_v53, 0.0  ;;  %v1170_v8 = vperm.slane %v1168_v57, 0  ;;  %v1171_v13 = vperm.slane %v1168_v57, 1  ;;  %v1718_v26 = vpop.eup %1717 }
  0x49   : > { %v1081_v7 = vadd.f32 %v1080_v0, %v1079_v63  ;;  %v818_v16 = vrot.slane %v817_v58, 2  ;;  %1725 = vlog2.f32 %v814_v14  ;;  %v734_v36 = vmul.f32 0.6931472, %v1718_v26 }
  0x4a   : > { %v1174_v20 = vsel %vm1036_vm15, %v1170_v8, 0.0  ;;  %v1175_v22 = vsel %vm1036_vm15, %v1171_v13, 0.0  ;;  %v1720_v32 = vpop.eup %1719  ;;  %1727 = vrcp.f32 %v814_v14  ;;  %v840_v53 = vrot.slane %v839_v38, 2 }
  0x4b   : > { %1082 = vadd.xlane.f32.xlu0 %v1081_v7  ;;  %v1176_v28 = vadd.f32 %v1175_v22, %v1174_v20  ;;  %v819_v30 = vadd.f32 %v818_v16, %v817_v58  ;;  %v1722_v44 = vpop.eup %1721  ;;  %v736_v46 = vmul.f32 0.6931472, %v1720_v32  ;;  %v737_v52 = vadd.f32 %v734_v36, %v1991_v40 }
  0x4c   : > { %v2135_v5 = vmul.f32 %v1722_v44, %v2055_v33  ;;  %v757_v54 = vadd.f32 %v756_v41, %v755_v24  ;;  %v836_v62 = vadd.f32 %v835_v49, %v834_v31  ;;  %v841_v1 = vadd.f32 %v840_v53, %v839_v38 }
  0x4d   : > { %1177 = vadd.xlane.f32.xlu1 %v1176_v28  ;;  %v820_v48 = vrot.slane %v819_v30, 1  ;;  %v1724_v3 = vpop.eup %1723  ;;  %v738_v57 = vadd.f32 %v736_v46, %v1993_v43  ;;  %v769_v63 = vsub.f32 %v737_v52, %v2112_v23  ;;  %v764_v13 = vadd.f32 %v763_v50, %v762_v25 }
  0x4e   : > { %v2139_v37 = vmul.f32 %v1724_v3, %v2063_v42  ;;  %v989_v0 = vmax.f32 %v2135_v5, 1e-12  ;;  %v758_v7 = vrot.slane %v757_v54, 2  ;;  %v842_v17 = vrot.slane %v841_v1, 1 }
  0x4f   : > { %v821_v58 = vadd.f32 %v820_v48, %v819_v30  ;;  %v1726_v8 = vpop.eup %1725  ;;  %v770_v40 = vsub.f32 %v738_v57, %v2116_v27  ;;  %v776_v43 = vmul.f32 %v1996_v45, %v769_v63  ;;  %v682_v25 = vsel %vm674_vm0, %v2098_v51, 0.0 }
  0x50   : > { %v990_v33 = vmax.f32 %v2139_v37, 1e-12  ;;  %v1728_v14 = vpop.eup %1727  ;;  %v991_v42 = vmin.f32 %v989_v0, 1.0  ;;  %v823_v16 = vmul.f32 0.6931472, %v1726_v8  ;;  %v759_v31 = vadd.f32 %v758_v7, %v757_v54 }
  0x51   : > { %1729 = vlog2.f32 %v821_v58  ;;  %v777_v18 = vmul.f32 %v2078_v55, %v770_v40  ;;  %v2148_v20 = vmul.f32 %v1728_v14, %v2090_v4  ;;  %v1186_v27 = vsel %vm1036_vm15, %v776_v43, 0.0 }
  0x52   : > { %v992_v23 = vmin.f32 %v990_v33, 1.0  ;;  %1731 = vrcp.f32 %v821_v58  ;;  %v1017_v22 = vmul.f32 %v2095_v10, %v991_v42  ;;  %v2153_v24 = vadd.f32 %v823_v16, %v2033_v12 }
  0x53   : > { %v1187_v28 = vsel %vm1036_vm15, %v777_v18, 0.0  ;;  %v1091_v30 = vmax.f32 %v2148_v20, 1e-12  ;;  %v843_v4 = vadd.f32 %v842_v17, %v841_v1  ;;  %v765_v38 = vrot.slane %v764_v13, 2 }
  0x54   : > { %v1018_v26 = vmul.f32 %v2098_v51, %v992_v23  ;;  %v1188_v32 = vadd.f32 %v1187_v28, %v1186_v27  ;;  %v858_v36 = vsub.f32 %v2153_v24, %v836_v62  ;;  %v760_v46 = vrot.slane %v759_v31, 1 }
  0x55   : > { %v1093_v12 = vmin.f32 %v1091_v30, 1.0  ;;  %v778_v48 = vmul.f32 6.0, %v737_v52  ;;  %v766_v3 = vadd.f32 %v765_v38, %v764_v13  ;;  %v779_v53 = vmul.f32 6.0, %v738_v57 }
  0x56   : > { %v1026_v44 = vsel %vm674_vm0, %v1018_v26, 0.0  ;;  %1189 = vadd.xlane.f32.xlu2 %v1188_v32  ;;  %v860_v50 = vmul.f32 %v858_v36, %v1996_v45  ;;  %v761_v63 = vadd.f32 %v760_v46, %v759_v31  ;;  %v675_v62 = vsel %vm674_vm0, %v2095_v10, 0.0 }
  0x57   : > { %v1730_v41 = vpop.eup %1729  ;;  %v1119_v54 = vmul.f32 %v2095_v10, %v1093_v12  ;;  %v683_v0 = vrot.slane %v682_v25, 4  ;;  %v1027_v1 = vrot.slane %v1026_v44, 4  ;;  %v767_v8 = vrot.slane %v766_v3, 1 }
  0x58   : > { %v825_v49 = vmul.f32 0.6931472, %v1730_v41  ;;  %v1732_v58 = vpop.eup %1731  ;;  %v1210_v40 = vsel %vm1036_vm15, %v860_v50, 0.0  ;;  %v780_v33 = vsub.f32 %v778_v48, %v761_v63  ;;  %v676_v57 = vrot.slane %v675_v62, 4 }
  0x59   : > { %v2170_v52 = vmul.f32 %v1732_v58, %v2118_v29  ;;  %v684_v13 = vadd.f32 %v683_v0, %v682_v25  ;;  %v768_v42 = vadd.f32 %v767_v8, %v766_v3  ;;  %v1121_v10 = vsel %vm674_vm0, %v1119_v54, 0.0 }
  0x5a   : > { %v2167_v7 = vadd.f32 %v825_v49, %v2036_v15  ;;  %v782_v16 = vmul.f32 %v780_v33, %v1996_v45  ;;  %v677_v15 = vadd.f32 %v676_v57, %v675_v62  ;;  %v1122_v18 = vrot.slane %v1121_v10, 4 }
  0x5b   : > { %v1092_v43 = vmax.f32 %v2170_v52, 1e-12  ;;  %v685_v17 = vrot.slane %v684_v13, 2  ;;  %v781_v27 = vsub.f32 %v779_v53, %v768_v42  ;;  %v1019_v26 = vsel %vm674_vm0, %v1017_v22, 0.0  ;;  %v2186_v53 = vld [vmem:[%s2075_s30 + $0x8] sm:$0x3f] }
  0x5c   : > { %v859_v14 = vsub.f32 %v2167_v7, %v843_v4  ;;  %v1198_v25 = vsel %vm1036_vm15, %v782_v16, 0.0  ;;  %v678_v28 = vrot.slane %v677_v15, 2  ;;  %v1123_v31 = vadd.f32 %v1122_v18, %v1121_v10 }
  0x5d   : > { %v1094_v23 = vmin.f32 %v1092_v43, 1.0  ;;  %v686_v30 = vadd.f32 %v685_v17, %v684_v13  ;;  %v783_v36 = vmul.f32 %v781_v27, %v2078_v55  ;;  %v1020_v38 = vrot.slane %v1019_v26, 4 }
  0x5e   : > { %v861_v29 = vmul.f32 %v859_v14, %v2078_v55  ;;  %v679_v12 = vadd.f32 %v678_v28, %v677_v15  ;;  %v1124_v48 = vrot.slane %v1123_v31, 2  ;;  %v1028_v3 = vadd.f32 %v1027_v1, %v1026_v44 }
  0x5f   : > { %v1120_v32 = vmul.f32 %v2098_v51, %v1094_v23  ;;  %v687_v46 = vrot.slane %v686_v30, 1  ;;  %v1199_v49 = vsel %vm1036_vm15, %v783_v36, 0.0  ;;  %v1021_v50 = vadd.f32 %v1020_v38, %v1019_v26 }
  0x60   : > { %v1211_v4 = vsel %vm1036_vm15, %v861_v29, 0.0  ;;  %v1116_v51 = vmul.f32 %v2082_v59, %v2080_v56  ;;  %v1200_v58 = vadd.f32 %v1199_v49, %v1198_v25  ;;  %v680_v54 = vrot.slane %v679_v12, 1 }
  0x61   : > { %v1212_v41 = vadd.f32 %v1211_v4, %v1210_v40  ;;  %v1128_v22 = vsel %vm674_vm0, %v1120_v32, 0.0  ;;  %v688_v63 = vadd.f32 %v687_v46, %v686_v30  ;;  %v1022_v0 = vrot.slane %v1021_v50, 2 }
  0x62   : > { %v1129_v62 = vrot.slane %v1128_v22, 4  ;;  %v1029_v8 = vrot.slane %v1028_v3, 2  ;;  %v874_v40 = vmax.f32 %v2106_v19, %v873_v47  ;;  %1201 = vadd.xlane.f32.xlu2 %v1200_v58  ;;  %v681_v33 = vadd.f32 %v680_v54, %v679_v12 }
  0x63   : > { %1213 = vadd.xlane.f32.xlu0 %v1212_v41  ;;  %v1043_v57 = vrot.slane %v688_v63, 7  ;;  %v1125_v44 = vadd.f32 %v1124_v48, %v1123_v31  ;;  %v879_v1 = vsel %vm674_vm0, %v2186_v53, -inf  ;;  %v1023_v59 = vadd.f32 %v1022_v0, %v1021_v50 }
  0x64   : > { %v1130_v13 = vadd.f32 %v1129_v62, %v1128_v22  ;;  %v1030_v14 = vadd.f32 %v1029_v8, %v1028_v3  ;;  %v875_v43 = vrot.slane %v874_v40, 2  ;;  %v1118_v42 = vadd.f32 %v1117_v6, %v1116_v51 }
  0x65   : > { %v880_v10 = vrot.slane %v879_v1, 4  ;;  %v1024_v15 = vrot.slane %v1023_v59, 1  ;;  %v1040_v19 = vsub.f32 1.0, %v2110_v21  ;;  %v1126_v47 = vrot.slane %v1125_v44, 1 }
  0x66   : > { %v1131_v16 = vrot.slane %v1130_v13, 2  ;;  %v1031_v17 = vrot.slane %v1030_v14, 1  ;;  %v876_v18 = vmax.f32 %v874_v40, %v875_v43  ;;  %v1044_v23 = vsel %vm1036_vm15, %v681_v33, %v1043_v57 }
  0x67   : > { %v881_v29 = vmax.f32 %v879_v1, %v880_v10  ;;  %v1025_v26 = vadd.f32 %v1024_v15, %v1023_v59  ;;  %v1141_v28 = vsub.f32 1.0, %v1118_v42  ;;  %v1046_v32 = vmul.f32 %v1044_v23, %v1040_v19 }
  0x68   : > { %v1132_v27 = vadd.f32 %v1131_v16, %v1130_v13  ;;  %v1032_v25 = vadd.f32 %v1031_v17, %v1030_v14  ;;  %v877_v30 = vrot.slane %v876_v18, 1  ;;  %v912_v38 = vmul.f32 %v2015_v60, %v2088_v2 }
  0x69   : > { %v882_v31 = vrot.slane %v881_v29, 2  ;;  %v1127_v41 = vadd.f32 %v1126_v47, %v1125_v44  ;;  %v844_v48 = vsel %vm674_vm0, %v1970_v9, 0.0  ;;  %v1142_v49 = vmul.f32 %v1141_v28, %v1044_v23 }
  0x6a   : > { %v1133_v56 = vrot.slane %v1132_v27, 1  ;;  %v1035_v6 = vrot.slane %v1032_v25, 7  ;;  %v2200_v4 = vmax.f32 %v876_v18, %v877_v30  ;;  %v913_v58 = vmul.f32 %v2018_v61, %v2186_v53 }
  0x6b   : > { %v883_v36 = vmax.f32 %v881_v29, %v882_v31  ;;  %v845_v54 = vrot.slane %v844_v48, 4  ;;  %v851_v63 = vsel %vm674_vm0, %v1972_v11, 0.0  ;;  %v914_v9 = vsel %vm674_vm0, %v912_v38, 0.0 }
  0x6c   : > { %v1134_v12 = vadd.f32 %v1133_v56, %v1132_v27  ;;  %v1037_v46 = vsel %vm1036_vm15, %v1025_v26, %v1035_v6  ;;  %v886_v3 = vsub.f32 %v2088_v2, %v2200_v4  ;;  %v852_v33 = vrot.slane %v851_v63, 4 }
  0x6d   : > { %v1039_v22 = vmul.f32 %v1037_v46, %v2110_v21  ;;  %v884_v50 = vrot.slane %v883_v36, 1  ;;  %v846_v40 = vadd.f32 %v845_v54, %v844_v48  ;;  %v915_v11 = vrot.slane %v914_v9, 4 }
  0x6e   : > { %v1137_v51 = vrot.slane %v1134_v12, 7  ;;  %v888_v8 = vmul.f32 1.442695, %v886_v3  ;;  %v921_v13 = vsel %vm674_vm0, %v913_v58, 0.0  ;;  %v853_v10 = vadd.f32 %v852_v33, %v851_v63 }
  0x6f   : > { %v1047_v62 = vadd.f32 %v1046_v32, %v1039_v22  ;;  %v2214_v0 = vmax.f32 %v883_v36, %v884_v50  ;;  %v847_v59 = vrot.slane %v846_v40, 2  ;;  %v928_v16 = vsel %vm674_vm0, %v2088_v2, 0.0 }
  0x70   : > { %v1138_v21 = vsel %vm1036_vm15, %v1127_v41, %v1137_v51  ;;  %1733 = vpow2.f32 %v888_v8  ;;  %v854_v17 = vrot.slane %v853_v10, 2  ;;  %v916_v19 = vadd.f32 %v915_v11, %v914_v9 }
  0x71   : > { %v1140_v57 = vmul.f32 %v1138_v21, %v1118_v42  ;;  %v1049_v44 = vsel %vm1048_vm1, %v1047_v62, 1.0  ;;  %v887_v1 = vsub.f32 %v2186_v53, %v2214_v0  ;;  %v848_v15 = vadd.f32 %v847_v59, %v846_v40 }
  0x72   : > { %1735 = vlog2.f32 %v1049_v44  ;;  %v922_v47 = vrot.slane %v921_v13, 4  ;;  %v929_v18 = vrot.slane %v928_v16, 4  ;;  %v855_v23 = vadd.f32 %v854_v17, %v853_v10 }
  0x73   : > { %v1143_v14 = vadd.f32 %v1142_v49, %v1140_v57  ;;  %v890_v43 = vmul.f32 1.442695, %v887_v1  ;;  %v849_v25 = vrot.slane %v848_v15, 1  ;;  %v917_v2 = vrot.slane %v916_v19, 2 }
  0x74   : > { %v856_v31 = vrot.slane %v855_v23, 1  ;;  %v923_v56 = vadd.f32 %v922_v47, %v921_v13  ;;  %v930_v6 = vadd.f32 %v929_v18, %v928_v16  ;;  %v862_v41 = vmul.f32 6.0, %v2153_v24 }
  0x75   : > { %v1144_v42 = vsel %vm1048_vm1, %v1143_v14, 1.0  ;;  %1737 = vpow2.f32 %v890_v43  ;;  %v935_v12 = vsel %vm674_vm0, %v2186_v53, 0.0  ;;  %v850_v49 = vadd.f32 %v849_v25, %v848_v15 }
  0x76   : > { %1739 = vlog2.f32 %v1144_v42  ;;  %v1734_v29 = vpop.eup %1733  ;;  %v857_v22 = vadd.f32 %v856_v31, %v855_v23  ;;  %v863_v50 = vmul.f32 6.0, %v2167_v7  ;;  %v918_v63 = vadd.f32 %v917_v2, %v916_v19 }
  0x77   : > { %v892_v26 = vsel %vm674_vm0, %v1734_v29, 0.0  ;;  %v931_v62 = vrot.slane %v930_v6, 2  ;;  %v936_v8 = vrot.slane %v935_v12, 4  ;;  %v924_v33 = vrot.slane %v923_v56, 2 }
  0x78   : > { %v1736_v27 = vpop.eup %1735  ;;  %v893_v30 = vrot.slane %v892_v26, 4  ;;  %v864_v57 = vsub.f32 %v862_v41, %v850_v49  ;;  %v865_v44 = vsub.f32 %v863_v50, %v857_v22  ;;  %v919_v43 = vrot.slane %v918_v63, 1 }
  0x79   : > { %v1051_v28 = vmul.f32 0.6931472, %v1736_v27  ;;  %v937_v10 = vadd.f32 %v936_v8, %v935_v12  ;;  %v932_v17 = vadd.f32 %v931_v62, %v930_v6  ;;  %v953_v18 = vmul.f32 %v2139_v37, %v2078_v55 }
  0x7a   : > { %v894_v38 = vadd.f32 %v893_v30, %v892_v26  ;;  %v866_v47 = vmul.f32 %v864_v57, %v1996_v45  ;;  %v867_v27 = vmul.f32 %v865_v44, %v2078_v55  ;;  %v925_v31 = vadd.f32 %v924_v33, %v923_v56 }
  0x7b   : > { %v1738_v32 = vpop.eup %1737  ;;  %v1052_v36 = vsub.f32 0.0, %v1051_v28  ;;  %v962_v30 = vadd.f32 %v2018_v61, %v953_v18  ;;  %v938_v2 = vrot.slane %v937_v10, 2  ;;  %v955_v6 = vmul.f32 %v2018_v61, %v953_v18 }
  0x7c   : > { %v1740_v46 = vpop.eup %1739  ;;  %v899_v48 = vsel %vm674_vm0, %v1738_v32, 0.0  ;;  %v895_v58 = vrot.slane %v894_v38, 2  ;;  %v1222_v32 = vsel %vm1036_vm15, %v866_v47, 0.0  ;;  %v1223_v41 = vsel %vm1036_vm15, %v867_v27, 0.0 }
  0x7d   : > { %v1146_v3 = vmul.f32 0.6931472, %v1740_v46  ;;  %v1053_v51 = vmul.f32 %v1987_v35, %v1052_v36  ;;  %v900_v54 = vrot.slane %v899_v48, 4  ;;  %v957_v56 = vsel %vm674_vm0, %v955_v6, 0.0 }
  0x7e   : > { %v896_v40 = vadd.f32 %v895_v58, %v894_v38  ;;  %v964_v38 = vsel %vm674_vm0, %v962_v30, 0.0  ;;  %v939_v50 = vadd.f32 %v938_v2, %v937_v10  ;;  %v926_v58 = vrot.slane %v925_v31, 1 }
  0x7f   : > { %v1147_v9 = vsub.f32 0.0, %v1146_v3  ;;  %v1055_v24 = vperm.slane %v1053_v51, 0  ;;  %v1056_v21 = vperm.slane %v1053_v51, 1  ;;  %v901_v53 = vadd.f32 %v900_v54, %v899_v48 }
  0x80   : > { %v897_v13 = vrot.slane %v896_v40, 1  ;;  %v933_v48 = vrot.slane %v932_v17, 1  ;;  %v920_v51 = vadd.f32 %v919_v43, %v918_v63  ;;  %v1224_v54 = vadd.f32 %v1223_v41, %v1222_v32 }
  0x81   : > { %v1148_v1 = vmul.f32 %v1987_v35, %v1147_v9  ;;  %v1059_v7 = vsel %vm1036_vm15, %v1055_v24, 0.0  ;;  %v1060_v11 = vsel %vm1036_vm15, %v1056_v21, 0.0  ;;  %v902_v14 = vrot.slane %v901_v53, 2 }
  0x82   : > { %v1061_v59 = vadd.f32 %v1060_v11, %v1059_v7  ;;  %v898_v42 = vadd.f32 %v897_v13, %v896_v40  ;;  %v952_v35 = vmul.f32 %v2135_v5, %v1996_v45  ;;  %v934_v8 = vadd.f32 %v933_v48, %v932_v17 }
  0x83   : > { %v1150_v16 = vperm.slane %v1148_v1, 0  ;;  %v1151_v15 = vperm.slane %v1148_v1, 1  ;;  %v903_v19 = vadd.f32 %v902_v14, %v901_v53  ;;  %v940_v9 = vrot.slane %v939_v50, 1 }
  0x84   : > { %1062 = vadd.xlane.f32.xlu0 %v1061_v59  ;;  %1741 = vlog2.f32 %v898_v42  ;;  %v961_v28 = vadd.f32 %v2015_v60, %v952_v35  ;;  %v954_v5 = vmul.f32 %v2015_v60, %v952_v35  ;;  %v927_v21 = vadd.f32 %v926_v58, %v925_v31 }
  0x85   : > { %v1154_v29 = vsel %vm1036_vm15, %v1150_v16, 0.0  ;;  %v1155_v23 = vsel %vm1036_vm15, %v1151_v15, 0.0  ;;  %v904_v25 = vrot.slane %v903_v19, 1  ;;  %v973_v33 = vmul.f32 %v2148_v20, %v1996_v45 }
  0x86   : > { %v1156_v26 = vadd.f32 %v1155_v23, %v1154_v29  ;;  %v963_v36 = vsel %vm674_vm0, %v961_v28, 0.0  ;;  %v956_v46 = vsel %vm674_vm0, %v954_v5, 0.0  ;;  %v1258_v44 = vsel %vm1036_vm15, %v1996_v45, 0.0 }
  0x87   : > { %v905_v37 = vadd.f32 %v904_v25, %v903_v19  ;;  %v965_v12 = vadd.f32 %v964_v38, %v963_v36  ;;  %v958_v49 = vadd.f32 %v957_v56, %v956_v46  ;;  %v1259_v63 = vsel %vm1036_vm15, %v2078_v55, 0.0 }
  0x88   : > { %1157 = vadd.xlane.f32.xlu1 %v1156_v26  ;;  %v941_v13 = vadd.f32 %v940_v9, %v939_v50  ;;  %v1260_v59 = vadd.f32 %v1259_v63, %v1258_v44  ;;  %v975_v14 = vmul.f32 %v2015_v60, %v973_v33  ;;  %v982_v27 = vadd.f32 %v2015_v60, %v973_v33 }
  0x89   : > { %1743 = vlog2.f32 %v905_v37  ;;  %v968_v28 = vsel %vm674_vm0, %v2015_v60, 0.0  ;;  %v969_v30 = vsel %vm674_vm0, %v2018_v61, 0.0 }
  0x8a   : > { %v1742_v22 = vpop.eup %1741  ;;  %v970_v2 = vadd.f32 %v969_v30, %v968_v28 }
  0x8b   : > { %v907_v3 = vmul.f32 0.6931472, %v1742_v22 }
  0x8d   : > { %v910_v62 = vadd.f32 %v907_v3, %v2200_v4  ;;  %v974_v4 = vmul.f32 %v2170_v52, %v2078_v55 }
  0x8f   : > { %v1744_v24 = vpop.eup %1743  ;;  %v942_v40 = vsub.f32 %v910_v62, %v920_v51  ;;  %v946_v53 = vmul.f32 6.0, %v910_v62  ;;  %v976_v16 = vmul.f32 %v2018_v61, %v974_v4  ;;  %v983_v26 = vadd.f32 %v2018_v61, %v974_v4 }
  0x90   : > { %1225 = vadd.xlane.f32.xlu1 %v1224_v54  ;;  %v909_v57 = vmul.f32 0.6931472, %v1744_v24 }
  0x91   : > { %v948_v1 = vsub.f32 %v946_v53, %v934_v8  ;;  %v944_v11 = vmul.f32 %v942_v40, %v1996_v45  ;;  %v978_v35 = vsel %vm674_vm0, %v976_v16, 0.0  ;;  %v985_v25 = vsel %vm674_vm0, %v983_v26, 0.0 }
  0x92   : > { %v911_v7 = vadd.f32 %v909_v57, %v2214_v0  ;;  %v977_v0 = vsel %vm674_vm0, %v975_v14, 0.0 }
  0x93   : > { %v950_v10 = vmul.f32 %v948_v1, %v1996_v45  ;;  %v1234_v42 = vsel %vm1036_vm15, %v944_v11, 0.0  ;;  %v979_v23 = vadd.f32 %v978_v35, %v977_v0 }
  0x94   : > { %v943_v20 = vsub.f32 %v911_v7, %v927_v21  ;;  %v947_v43 = vmul.f32 6.0, %v911_v7 }
  0x95   : > { %v1246_v47 = vsel %vm1036_vm15, %v950_v10, 0.0 }
  0x96   : > { %v945_v15 = vmul.f32 %v943_v20, %v2078_v55  ;;  %v949_v52 = vsub.f32 %v947_v43, %v941_v13 }
  0x98   : > { %1261 = vadd.xlane.f32.xlu1 %v1260_v59  ;;  %v1235_v17 = vsel %vm1036_vm15, %v945_v15, 0.0  ;;  %v951_v19 = vmul.f32 %v949_v52, %v2078_v55  ;;  %v984_v55 = vsel %vm674_vm0, %v982_v27, 0.0 }
  0x99   : > { %v1236_v18 = vadd.f32 %v1235_v17, %v1234_v42  ;;  %v986_v31 = vadd.f32 %v985_v25, %v984_v55 }
  0x9a   : > { %v1247_v45 = vsel %vm1036_vm15, %v951_v19, 0.0 }
  0x9b   : > { %1237 = vadd.xlane.f32.xlu2 %v1236_v18  ;;  %v1248_v29 = vadd.f32 %v1247_v45, %v1246_v47 }
  0x9d   : > { %1249 = vadd.xlane.f32.xlu0 %v1248_v29 }
  0xa0   : > { %980 = vadd.xlane.f32.xlu1 %v979_v23 }
  0xa3   : > { %959 = vadd.xlane.f32.xlu2 %v958_v49 }
  0xa5   : > { %966 = vadd.xlane.f32.xlu0 %v965_v12 }
  0xab   : > { %987 = vadd.xlane.f32.xlu2 %v986_v31 }
  0xad   : > { %971 = vadd.xlane.f32.xlu0 %v970_v2 }
  0xbe   : > { %v1083_v60 = vpop.xlane.xlu0 %1082 }
  0xbf   : > { %v1084_v5 = vrot.slane %v1083_v60, 4 }
  0xc0   : > { %v1178_v37 = vpop.xlane.xlu1 %1177 }
  0xc1   : > { %v1085_v36 = vadd.f32 %v1084_v5, %v1083_v60  ;;  %v1179_v38 = vrot.slane %v1178_v37, 4 }
  0xc3   : > { %v1086_v56 = vrot.slane %v1085_v36, 2  ;;  %v1180_v48 = vadd.f32 %v1179_v38, %v1178_v37 }
  0xc5   : > { %v1181_v34 = vrot.slane %v1180_v48, 2  ;;  %v1087_v62 = vadd.f32 %v1086_v56, %v1085_v36 }
  0xc7   : > { %v1088_v57 = vrot.slane %v1087_v62, 1  ;;  %v1182_v44 = vadd.f32 %v1181_v34, %v1180_v48 }
  0xc9   : > { %v1190_v61 = vpop.xlane.xlu2 %1189  ;;  %v1089_v20 = vadd.f32 %v1088_v57, %v1087_v62  ;;  %v1183_v43 = vrot.slane %v1182_v44, 1  ;;  %v1319_v62 = vld [vmem:[%s2289_s21] sm:$0x3f] }
  0xca   : > { %v1191_v41 = vrot.slane %v1190_v61, 4 }
  0xcb   : > { %v1184_v19 = vadd.f32 %v1183_v43, %v1182_v44 }
  0xcc   : > { %v1192_v22 = vadd.f32 %v1191_v41, %v1190_v61 }
  0xce   : > { %v1193_v8 = vrot.slane %v1192_v22, 2 }
  0xd0   : > { %v1194_v1 = vadd.f32 %v1193_v8, %v1192_v22 }
  0xd2   : > { %v1195_v15 = vrot.slane %v1194_v1, 1 }
  0xd4   : > { %v1196_v35 = vadd.f32 %v1195_v15, %v1194_v1 }
  0xd5   : > { %v1202_v32 = vpop.xlane.xlu2 %1201 }
  0xd6   : > { %v1214_v6 = vpop.xlane.xlu0 %1213  ;;  %v1203_v12 = vrot.slane %v1202_v32, 4 }
  0xd7   : > { %v1215_v46 = vrot.slane %v1214_v6, 4 }
  0xd8   : > { %v1204_v3 = vadd.f32 %v1203_v12, %v1202_v32 }
  0xd9   : > { %v1216_v51 = vadd.f32 %v1215_v46, %v1214_v6 }
  0xda   : > { %v1205_v21 = vrot.slane %v1204_v3, 2 }
  0xdb   : > { %v1217_v40 = vrot.slane %v1216_v51, 2 }
  0xdc   : > { %v1206_v7 = vadd.f32 %v1205_v21, %v1204_v3 }
  0xdd   : > { %v1218_v59 = vadd.f32 %v1217_v40, %v1216_v51 }
  0xde   : > { %v1207_v42 = vrot.slane %v1206_v7, 1 }
  0xdf   : > { %v1219_v17 = vrot.slane %v1218_v59, 1 }
  0xe0   : > { %v1208_v18 = vadd.f32 %v1207_v42, %v1206_v7 }
  0xe1   : > { %v1220_v45 = vadd.f32 %v1219_v17, %v1218_v59 }
  0xf7   : > { %v1063_v49 = vpop.xlane.xlu0 %1062 }
  0xf8   : > { %v1064_v50 = vrot.slane %v1063_v49, 4 }
  0xfa   : > { %v1065_v58 = vadd.f32 %v1064_v50, %v1063_v49  ;;  %v2308_v50 = vand.u32 127, %v654_v39 }
  0xfb   : > { %v1158_v54 = vpop.xlane.xlu1 %1157 }
  0xfc   : > { %v1159_v9 = vrot.slane %v1158_v54, 4  ;;  %v1066_v24 = vrot.slane %v1065_v58, 2  ;;  %vm1276_vm0 = vcmp.eq.s32.totalorder %v2308_v50, 1  ;;  %vm1272_vm2 = vcmp.eq.s32.totalorder %v2308_v50, 0 }
  0xfd   : > { %vm1280_vm3 = vcmp.eq.s32.totalorder %v2308_v50, 2  ;;  %vm1284_vm4 = vcmp.eq.s32.totalorder %v2308_v50, 3  ;;  %vm1288_vm5 = vcmp.eq.s32.totalorder %v2308_v50, 4  ;;  %vm1292_vm6 = vcmp.eq.s32.totalorder %v2308_v50, 5 }
  0xfe   : > { %v1160_v53 = vadd.f32 %v1159_v9, %v1158_v54  ;;  %v1067_v33 = vadd.f32 %v1066_v24, %v1065_v58  ;;  %vm1296_vm7 = vcmp.eq.s32.totalorder %v2308_v50, 6  ;;  %vm1300_vm8 = vcmp.eq.s32.totalorder %v2308_v50, 7 }
  0xff   : > { %vm1304_vm9 = vcmp.eq.s32.totalorder %v2308_v50, 8  ;;  %vm1308_vm10 = vcmp.eq.s32.totalorder %v2308_v50, 9  ;;  %vm1312_vm11 = vcmp.eq.s32.totalorder %v2308_v50, 10 }
 0x100   : > { %v1161_v63 = vrot.slane %v1160_v53, 2  ;;  %v1068_v4 = vrot.slane %v1067_v33, 1 }
 0x102   : > { %v1069_v11 = vadd.f32 %v1068_v4, %v1067_v33  ;;  %v1162_v13 = vadd.f32 %v1161_v63, %v1160_v53  ;;  %v1327_v63 = vld [vmem:[%s2303_s20] sm:$0x3f] }
 0x103   : > { %v1226_v14 = vpop.xlane.xlu1 %1225 }
 0x104   : > { %v1227_v10 = vrot.slane %v1226_v14, 4  ;;  %1619 = vpush %v1069_v11  ;;  %v1163_v16 = vrot.slane %v1162_v13, 1 }
 0x105   : > { %1621 = vpush %v1089_v20 }
 0x106   : > { %v1228_v52 = vadd.f32 %v1227_v10, %v1226_v14  ;;  %v1164_v0 = vadd.f32 %v1163_v16, %v1162_v13 }
 0x108   : > { %v1229_v47 = vrot.slane %v1228_v52, 2  ;;  %1623 = vpush %v1164_v0 }
 0x109   : > { %1625 = vpush %v1184_v19 }
 0x10a   : > { %1627 = vpush %v1196_v35  ;;  %v1230_v29 = vadd.f32 %v1229_v47, %v1228_v52 }
 0x10b   : > { %1629 = vpush %v1208_v18  ;;  %v1262_v23 = vpop.xlane.xlu1 %1261 }
 0x10c   : > { %1631 = vpush %v1220_v45  ;;  %v1263_v27 = vrot.slane %v1262_v23, 4  ;;  %v1231_v26 = vrot.slane %v1230_v29, 1 }
 0x10e   : > { %v1264_v55 = vadd.f32 %v1263_v27, %v1262_v23  ;;  %v1232_v25 = vadd.f32 %v1231_v26, %v1230_v29  ;;  %v1238_v28 = vpop.xlane.xlu2 %1237 }
 0x10f   : > { %v1239_v30 = vrot.slane %v1238_v28, 4 }
 0x110   : > { %v1265_v31 = vrot.slane %v1264_v55, 2  ;;  %1633 = vpush %v1232_v25  ;;  %v1250_v2 = vpop.xlane.xlu0 %1249 }
 0x111   : > { %v1240_v60 = vadd.f32 %v1239_v30, %v1238_v28  ;;  %v1251_v61 = vrot.slane %v1250_v2, 4 }
 0x112   : > { %v1266_v5 = vadd.f32 %v1265_v31, %v1264_v55 }
 0x113   : > { %v1241_v6 = vrot.slane %v1240_v60, 2  ;;  %v1252_v37 = vadd.f32 %v1251_v61, %v1250_v2  ;;  %v981_v24 = vpop.xlane.xlu1 %980 }
 0x114   : > { %v1267_v38 = vrot.slane %v1266_v5, 1  ;;  %v1328_v33 = vsel %vm1272_vm2, %v981_v24, 0.0 }
 0x115   : > { %v1253_v32 = vrot.slane %v1252_v37, 2  ;;  %v1242_v36 = vadd.f32 %v1241_v6, %v1240_v60  ;;  %v1316_v60 = vld [vmem:[%s2296_s11] sm:$0x1] }
 0x116   : > { %v1268_v48 = vadd.f32 %v1267_v38, %v1266_v5  ;;  %v960_v51 = vpop.xlane.xlu2 %959 }
 0x117   : > { %v1243_v41 = vrot.slane %v1242_v36, 1  ;;  %v1254_v12 = vadd.f32 %v1253_v32, %v1252_v37  ;;  %v1320_v39 = vsel %vm1272_vm2, %v960_v51, 0.0 }
 0x118   : > { %v967_v22 = vpop.xlane.xlu0 %966 }
 0x119   : > { %v1244_v46 = vadd.f32 %v1243_v41, %v1242_v36  ;;  %v1255_v56 = vrot.slane %v1254_v12, 1  ;;  %v1321_v3 = vsel %vm1276_vm0, %v967_v22, 0.0 }
 0x11a   : > { %v1322_v54 = vadd.f32 %v1321_v3, %v1320_v39 }
 0x11b   : > { %1635 = vpush %v1244_v46  ;;  %v1256_v49 = vadd.f32 %v1255_v56, %v1254_v12 }
 0x11d   : > { %1637 = vpush %v1256_v49 }
 0x11e   : > { %1639 = vpush %v1268_v48  ;;  %v988_v21 = vpop.xlane.xlu2 %987 }
 0x11f   : > { %v1329_v57 = vsel %vm1276_vm0, %v988_v21, 0.0 }
 0x120   : > { %v972_v58 = vpop.xlane.xlu0 %971  ;;  %v1330_v44 = vadd.f32 %v1329_v57, %v1328_v33 }
 0x121   : > { %v1323_v34 = vsel %vm1280_vm3, %v972_v58, 0.0 }
 0x122   : > { %v1324_v8 = vadd.f32 %v1323_v34, %v1322_v54  ;;  %v1331_v7 = vadd.f32 %v1330_v44, %v1323_v34 }
 0x124   : > { %v1325_v9 = vadd.f32 %v1324_v8, %v1319_v62  ;;  %v1332_v11 = vadd.f32 %v1331_v7, %v1327_v63 }
 0x126   : > { %1326 = vst [vmem:[%s2289_s21] sm:$0x3f] %v1325_v9 }
 0x127   : > { %1333 = vst [vmem:[%s2303_s20] sm:$0x3f] %v1332_v11 }
 0x135   : > { %s2311_s27 = spop %1619 }
 0x136   : > { %s2317_s22 = spop %1621  ;;  %v1297_v52 = vstv %s2311_s27 }
 0x137   : > { %v1301_v47 = vstv %s2317_s22  ;;  %v1298_v18 = vsel %vm1296_vm7, %v1297_v52, 0.0  ;;  %s1351_s22 = scalar_lea.hbm %s2402_s8, %s1815_s16 }
 0x138   : > { %v1302_v23 = vsel %vm1300_vm8, %v1301_v47, 0.0 }
 0x139   : > { %s2323_s28 = spop %1623 }
 0x13a   : > { %s2326_s24 = spop %1625  ;;  %v1305_v45 = vstv %s2323_s28  ;;  %s1353_s28 = sshll.u32 %s2296_s11, 4  ;;  %s1354_s28 = int_to_ptr.vmem [resolvable:$true] %s1353_s28 }
 0x13b   : > { %s1628_s30 = spop %1627  ;;  %v1309_v27 = vstv %s2326_s24  ;;  %v1306_v55 = vsel %vm1304_vm9, %v1305_v45, 0.0  ;;  %s1335_s24 = scalar_lea.sflag [#allocation3], %s546_s26 }
 0x13c   : > { %s1630_s29 = spop %1629  ;;  %v1273_v40 = vstv %s1628_s30  ;;  %v1310_v30 = vsel %vm1308_vm10, %v1309_v27, 0.0  ;;  %s1355_s30 = sshll.u32 %s1351_s22, 4  ;;  %s1356_s30 = int_to_ptr.hbm [resolvable:$true] %s1355_s30 }
 0x13d   : > { %v1277_v53 = vstv %s1630_s29  ;;  %s1632_s15 = spop %1631  ;;  %v1274_v4 = vsel %vm1272_vm2, %v1273_v40, 0.0  ;;  %s1759_s29 = sshra.s32 %s1356_s30, 4  ;;  %s1760_s29 = int_to_ptr.hbm [resolvable:$true] %s1759_s29 }
 0x13e   : > { %v1278_v1 = vsel %vm1276_vm0, %v1277_v53, 0.0  ;;  %v1281_v59 = vstv %s1632_s15  ;;  %s1761_s15 = scalar_lea.hbm %s1760_s29, 1  ;;  %p1766_p1 = scmp.lt.s32.totalorder %s1760_s29, %s2402_s8 }
 0x13f   : > { %v1279_v13 = vadd.f32 %v1278_v1, %v1274_v4  ;;  %v1282_v20 = vsel %vm1280_vm3, %v1281_v59, 0.0  ;;  %p1762_p12 = scmp.ne.s32.totalorder %s1760_s29, %s1761_s15 }
 0x141   : > { %s1634_s17 = spop %1633  ;;  %v1283_v10 = vadd.f32 %v1282_v20, %v1279_v13  ;;  %p1763_p13 = pnand %p1762_p12, %p1921_p4 }
 0x142   : > { %v1285_v14 = vstv %s1634_s17 }
 0x143   : > { %v1286_v43 = vsel %vm1284_vm4, %v1285_v14, 0.0  ;;  %p1764_p0 = pneg %p1763_p13 }
 0x144   : > { %v1287_v16 = vadd.f32 %v1286_v43, %v1283_v10 }
 0x14c   : > { %s1636_s21 = spop %1635 }
 0x14d   : > { %v1289_v15 = vstv %s1636_s21  ;;  %s1765_s21 = scalar_lea.hbm %s2402_s8, 2 }
 0x14e   : > { %v1290_v42 = vsel %vm1288_vm5, %v1289_v15, 0.0  ;;  %s1638_s12 = spop %1637  ;;  %p1767_p2 = scmp.lt.s32.totalorder %s1765_s21, %s1761_s15 }
 0x14f   : > { %v1291_v0 = vadd.f32 %v1290_v42, %v1287_v16  ;;  %v1293_v17 = vstv %s1638_s12  ;;  %s1640_s19 = spop %1639 }
 0x150   : > { %v1294_v19 = vsel %vm1292_vm6, %v1293_v17, 0.0  ;;  %v1313_v28 = vstv %s1640_s19  ;;  %p1768_p3 = por %p1767_p2, %p1766_p1 }
 0x151   : > { %v1295_v35 = vadd.f32 %v1294_v19, %v1291_v0  ;;  %v1314_v2 = vsel %vm1312_vm11, %v1313_v28, 0.0 }
 0x152   : > { %p1769_p5 = pnand %p1768_p3, %p1764_p0 }
 0x153   : > { %v1299_v29 = vadd.f32 %v1298_v18, %v1295_v35 }
 0x155   : > { %v1303_v26 = vadd.f32 %v1302_v23, %v1299_v29 }
 0x157   : > { %v1307_v25 = vadd.f32 %v1306_v55, %v1303_v26 }
 0x159   : > { %v1311_v31 = vadd.f32 %v1310_v30, %v1307_v25 }
 0x15b   : > { %v1315_v61 = vadd.f32 %v1314_v2, %v1311_v31 }
 0x15d   : > { %v1317_v5 = vadd.f32 %v1316_v60, %v1315_v61 }
 0x15f   : > { %1318 = vst [vmem:[%s2296_s11] sm:$0x1] %v1317_v5 }
 0x160   : > { %1772 = shalt.err (!%p1769_p5)
}
 0x161   : > { %1641 = dma.vmem_to_hbm [thread:$0]  (%p1921_p4), %s1354_s28, 16, %s1356_s30, %s1335_s24  }
 0x162 PF: > { %p1647_p6 = scmp.ge.s32.totalorder %s1823_s18, 2  ;;  %s1373_s26 = sand.u32 1, %s1803_s13  }
 0x163   : > { %s1374_s11 = scalar_lea.sflag [#allocation3], %s1373_s26 }
 0x164   : > { %p1644_p7 = pnand %p1647_p6, %p1928_p8 }
 0x166   : > { %p1645_p9 = pneg %p1644_p7 }
 0x168   : > { %1798 = dma.done.wait (%p1645_p9), %s1374_s11, 16  }
 0x169   : > { %1800 = vsyncadd (%p1645_p9), %s1374_s11, 4294967280  ;;  %s24_s18 = sadd.s32 1, %s1823_s18   ;;  %s2422_s20 = sld [smem:[#allocation5_spill]] }
 0x16a   : > { %p21_p10 = scmp.ge.s32.totalorder %s24_s18, 4   ;;  %s2423_s15 = sld [smem:[#allocation8_spill]] }
 0x16b   : > { %s2424_s16 = sld [smem:[#allocation6_spill]]  ;;  %s2426_s13 = smov %s1807_s14 }
 0x16c   : > { %s2425_s17 = sld [smem:[#allocation7_spill]]  ;;  %23 = sbr.rel (!%p21_p10) target bundleno = 4 (0x4), region = 136 }
 0x16f   : > { %s2427_s14 = smov %s2422_s20 }
 0x171   :  { %1393 = vsyncpa [#allocation3], 1 }
 0x172   :  { %1395 = vsyncpa [#allocation3 + $0x1], 1 }

</bundles_post_ra>
